<compile_context>
chip_gen: v5e
topology: v5e:2x2
jax: 0.10.0
libtpu: 0.0.40
codegen_flags: <defaults>
</compile_context>

<pallas_src>
import functools

import jax
import jax.numpy as jnp
from jax.experimental import pallas as pl
from jax.experimental.pallas import tpu as pltpu

_VMEM_LIMIT = 48 * 1024 * 1024  # > 32 MiB default scoped limit, < v7x 64 MiB physical


def _round_up(x, m):
    return (x + m - 1) // m * m


def _row_tile(m, target=256):
    """Largest row tile <= target that is a multiple of 8 and divides m."""
    if m % 8:
        return m                      # fallback: single full block (block dim == array dim)
    t = min(m, target)
    while t % 8 or m % t:
        t -= 1
    return t


def _layernorm_val(x, g, b, eps):
    xf = x.astype(jnp.float32)
    mean = jnp.mean(xf, axis=-1, keepdims=True)
    var = jnp.mean(jnp.square(xf - mean), axis=-1, keepdims=True)
    return (xf - mean) * jax.lax.rsqrt(var + eps) * g + b


# ----------------------------------------------------------------------------- kernels
def _linear_kernel(x_ref, w_ref, b_ref, o_ref):
    y = jnp.dot(x_ref[...], w_ref[...], preferred_element_type=jnp.float32)
    o_ref[...] = (y + b_ref[...]).astype(o_ref.dtype)


def linear(x, w, b, *, target_tile=256):
    """x: [M, K] @ w: [K, N] + b: [N], row-tiled over an M-parallel grid."""
    M, K = x.shape
    _, N = w.shape
    tm = _row_tile(M, target_tile)
    return pl.pallas_call(
        _linear_kernel,
        out_shape=jax.ShapeDtypeStruct((M, N), x.dtype),
        grid=(M // tm,),
        in_specs=[
            pl.BlockSpec((tm, K), lambda i: (i, 0)),
            pl.BlockSpec((K, N), lambda i: (0, 0)),
            pl.BlockSpec((1, N), lambda i: (0, 0)),
        ],
        out_specs=pl.BlockSpec((tm, N), lambda i: (i, 0)),
        compiler_params=pltpu.CompilerParams(
            dimension_semantics=("parallel",), vmem_limit_bytes=_VMEM_LIMIT),
    )(x, w, b.reshape(1, N))


def _ln_linear_kernel(x_ref, g_ref, bln_ref, w_ref, b_ref, o_ref, *, eps):
    y = _layernorm_val(x_ref[...], g_ref[...], bln_ref[...], eps)
    out = jnp.dot(y, w_ref[...], preferred_element_type=jnp.float32) + b_ref[...]
    o_ref[...] = out.astype(o_ref.dtype)


def ln_linear(x, g, bln, w, b, eps=1e-6, *, target_tile=256):
    """Fused LayerNorm + Linear: LN(x) @ w + b."""
    M, K = x.shape
    _, N = w.shape
    tm = _row_tile(M, target_tile)
    return pl.pallas_call(
        functools.partial(_ln_linear_kernel, eps=eps),
        out_shape=jax.ShapeDtypeStruct((M, N), x.dtype),
        grid=(M // tm,),
        in_specs=[
            pl.BlockSpec((tm, K), lambda i: (i, 0)),
            pl.BlockSpec((1, K), lambda i: (0, 0)),
            pl.BlockSpec((1, K), lambda i: (0, 0)),
            pl.BlockSpec((K, N), lambda i: (0, 0)),
            pl.BlockSpec((1, N), lambda i: (0, 0)),
        ],
        out_specs=pl.BlockSpec((tm, N), lambda i: (i, 0)),
        compiler_params=pltpu.CompilerParams(
            dimension_semantics=("parallel",), vmem_limit_bytes=_VMEM_LIMIT),
    )(x, g.reshape(1, K), bln.reshape(1, K), w, b.reshape(1, N))


def _ln_mlp_kernel(x_ref, g_ref, bln_ref, w1_ref, b1_ref, w2_ref, b2_ref, o_ref, *, eps):
    x = x_ref[...].astype(jnp.float32)
    y = _layernorm_val(x, g_ref[...], bln_ref[...], eps)
    h = jnp.dot(y, w1_ref[...], preferred_element_type=jnp.float32) + b1_ref[...]
    # TODO(synk): timm ViT uses exact (erf) GELU; tanh approximation for Mosaic-safe lowering.
    h = jax.nn.gelu(h, approximate=True)
    out = jnp.dot(h, w2_ref[...], preferred_element_type=jnp.float32) + b2_ref[...]
    o_ref[...] = (x + out).astype(o_ref.dtype)      # residual fused into the epilogue


def ln_mlp_residual(x, g, bln, w1, b1, w2, b2, eps=1e-6, *, target_tile=256):
    """Fused x + FC2(GELU(FC1(LN(x))))."""
    M, D = x.shape
    _, H = w1.shape
    tm = _row_tile(M, target_tile)
    return pl.pallas_call(
        functools.partial(_ln_mlp_kernel, eps=eps),
        out_shape=jax.ShapeDtypeStruct((M, D), x.dtype),
        grid=(M // tm,),
        in_specs=[
            pl.BlockSpec((tm, D), lambda i: (i, 0)),
            pl.BlockSpec((1, D), lambda i: (0, 0)),
            pl.BlockSpec((1, D), lambda i: (0, 0)),
            pl.BlockSpec((D, H), lambda i: (0, 0)),
            pl.BlockSpec((1, H), lambda i: (0, 0)),
            pl.BlockSpec((H, D), lambda i: (0, 0)),
            pl.BlockSpec((1, D), lambda i: (0, 0)),
        ],
        out_specs=pl.BlockSpec((tm, D), lambda i: (i, 0)),
        compiler_params=pltpu.CompilerParams(
            dimension_semantics=("parallel",), vmem_limit_bytes=_VMEM_LIMIT),
    )(x, g.reshape(1, D), bln.reshape(1, D), w1, b1.reshape(1, H), w2, b2.reshape(1, D))


def _ln_kernel(x_ref, g_ref, b_ref, o_ref, *, eps):
    o_ref[...] = _layernorm_val(x_ref[...], g_ref[...], b_ref[...], eps).astype(o_ref.dtype)


def layernorm(x, g, b, eps=1e-6, *, target_tile=512):
    M, D = x.shape
    tm = _row_tile(M, target_tile)
    return pl.pallas_call(
        functools.partial(_ln_kernel, eps=eps),
        out_shape=jax.ShapeDtypeStruct((M, D), x.dtype),
        grid=(M // tm,),
        in_specs=[
            pl.BlockSpec((tm, D), lambda i: (i, 0)),
            pl.BlockSpec((1, D), lambda i: (0, 0)),
            pl.BlockSpec((1, D), lambda i: (0, 0)),
        ],
        out_specs=pl.BlockSpec((tm, D), lambda i: (i, 0)),
        compiler_params=pltpu.CompilerParams(dimension_semantics=("parallel",)),
    )(x, g.reshape(1, D), b.reshape(1, D))


def _attn_proj_kernel(qkv_ref, res_ref, w_ref, b_ref, o_ref, *, heads, dh, t_valid):
    T = qkv_ref.shape[1]
    D = heads * dh
    qkv = qkv_ref[0].astype(jnp.float32)                        # (T, 3D): all heads resident
    key_mask = jax.lax.broadcasted_iota(jnp.int32, (1, T), 1) < t_valid
    head_outs = []
    for h in range(heads):                                      # static unroll over heads
        q = qkv[:, h * dh:(h + 1) * dh]                         # scale already folded into W_qkv
        k = qkv[:, D + h * dh:D + (h + 1) * dh]
        v = qkv[:, 2 * D + h * dh:2 * D + (h + 1) * dh]
        # q @ k^T without an explicit in-VMEM transpose of k.
        s = jax.lax.dot_general(q, k, (((1,), (1,)), ((), ())),
                                preferred_element_type=jnp.float32)   # (T, T)
        s = jnp.where(key_mask, s, -1e30)                       # mask padded key tokens
        m = jnp.max(s, axis=-1, keepdims=True)
        p = jnp.exp(s - m)
        p = p * pl.reciprocal(jnp.sum(p, axis=-1, keepdims=True), approx=True)
        head_outs.append(jnp.dot(p, v, preferred_element_type=jnp.float32))
    o = jnp.concatenate(head_outs, axis=-1)                     # (T, D)
    y = jnp.dot(o, w_ref[...], preferred_element_type=jnp.float32) + b_ref[...]
    o_ref[0] = (res_ref[0].astype(jnp.float32) + y).astype(o_ref.dtype)


def attention_proj_residual(qkv, res, wproj, bproj, *, heads, t_valid):
    """Fused multi-head attention + output projection + residual add. Grid over batch."""
    B, T, threeD = qkv.shape
    D = threeD // 3
    dh = D // heads
    return pl.pallas_call(
        functools.partial(_attn_proj_kernel, heads=heads, dh=dh, t_valid=t_valid),
        out_shape=jax.ShapeDtypeStruct((B, T, D), res.dtype),
        grid=(B,),
        in_specs=[
            pl.BlockSpec((1, T, threeD), lambda b: (b, 0, 0)),
            pl.BlockSpec((1, T, D), lambda b: (b, 0, 0)),
            pl.BlockSpec((D, D), lambda b: (0, 0)),
            pl.BlockSpec((1, D), lambda b: (0, 0)),
        ],
        out_specs=pl.BlockSpec((1, T, D), lambda b: (b, 0, 0)),
        compiler_params=pltpu.CompilerParams(
            dimension_semantics=("parallel",), vmem_limit_bytes=_VMEM_LIMIT),
    )(qkv, res, wproj, bproj.reshape(1, D))


# ----------------------------------------------------------------------------- model
def init_params(key, *, cin, patch, dim, heads, depth, mlp_hidden, num_tokens):
    def nrm(k, shape):
        return (0.02 * jax.random.normal(k, shape)).astype(jnp.float32)

    keys = jax.random.split(key, 4 + depth)
    params = {
        "patch_w": nrm(keys[0], (cin * patch * patch, dim)),
        "patch_b": jnp.zeros((dim,), jnp.float32),
        "cls": nrm(keys[1], (1, 1, dim)),
        "pos": nrm(keys[2], (1, num_tokens, dim)),
        "norm_g": jnp.ones((dim,), jnp.float32),
        "norm_b": jnp.zeros((dim,), jnp.float32),
        "blocks": [],
    }
    for i in range(depth):
        bk = jax.random.split(keys[4 + i], 4)
        params["blocks"].append({
            "ln1_g": jnp.ones((dim,), jnp.float32),
            "ln1_b": jnp.zeros((dim,), jnp.float32),
            "qkv_w": nrm(bk[0], (dim, 3 * dim)),
            "qkv_b": jnp.zeros((3 * dim,), jnp.float32),
            "proj_w": nrm(bk[1], (dim, dim)),
            "proj_b": jnp.zeros((dim,), jnp.float32),
            "ln2_g": jnp.ones((dim,), jnp.float32),
            "ln2_b": jnp.zeros((dim,), jnp.float32),
            "fc1_w": nrm(bk[2], (dim, mlp_hidden)),
            "fc1_b": jnp.zeros((mlp_hidden,), jnp.float32),
            "fc2_w": nrm(bk[3], (mlp_hidden, dim)),
            "fc2_b": jnp.zeros((dim,), jnp.float32),
        })
    return params


def vit_wrapper_forward(x, params, *, patch, dim, heads):
    """Reproduces PretrainedViTWrapper.forward (non-siglip branch, n=1):
    returns (feats NCHW [B, D, Hp, Wp], cls_token [B, 1, D]) of the last block,
    with the final LayerNorm applied (norm=True)."""
    B, cin, H, W = x.shape
    Hp, Wp = H // patch, W // patch
    N = Hp * Wp
    dh = dim // heads
    scale = dh ** -0.5

    # --- patch embedding (Conv2d k=p, stride=p) as unfold + row-tiled matmul ---
    # TODO(synk): the NCHW patch unfold stays in XLA; an Element-indexed BlockSpec gather
    # inside the patch-embed kernel would save one HBM pass over the image.
    xp = x.reshape(B, cin, Hp, patch, Wp, patch)
    xp = xp.transpose(0, 2, 4, 1, 3, 5).reshape(B * N, cin * patch * patch)
    tok = linear(xp, params["patch_w"], params["patch_b"]).reshape(B, N, dim)

    # --- cls token + positional embedding, pad T to a multiple of 8 (sublane) ---
    cls = jnp.broadcast_to(params["cls"], (B, 1, dim))
    tok = jnp.concatenate([cls, tok], axis=1) + params["pos"]          # [B, T, D]
    T = 1 + N
    T_pad = _round_up(T, 8)
    tok = jnp.pad(tok, ((0, 0), (0, T_pad - T), (0, 0)))               # [B, T_pad, D]
    M = B * T_pad

    # --- transformer blocks: 3 fused pallas_calls per block ---
    for blk in params["blocks"]:
        # Fold the attention scale into the Q columns of the qkv projection (weight fold).
        qkv_w = blk["qkv_w"].at[:, :dim].multiply(scale)
        qkv_b = blk["qkv_b"].at[:dim].multiply(scale)

        qkv = ln_linear(tok.reshape(M, dim), blk["ln1_g"], blk["ln1_b"], qkv_w, qkv_b)
        tok = attention_proj_residual(
            qkv.reshape(B, T_pad, 3 * dim), tok, blk["proj_w"], blk["proj_b"],
            heads=heads, t_valid=T)
        tok = ln_mlp_residual(
            tok.reshape(M, dim), blk["ln2_g"], blk["ln2_b"],
            blk["fc1_w"], blk["fc1_b"], blk["fc2_w"], blk["fc2_b"]).reshape(B, T_pad, dim)

    # --- forward_intermediates(norm=True): apply final norm to the intermediate ---
    out = layernorm(tok.reshape(M, dim), params["norm_g"], params["norm_b"])
    out = out.reshape(B, T_pad, dim)[:, :T]

    cls_token = out[:, :1, :]                                          # prefix tokens [B, 1, D]
    feats = out[:, 1:, :].reshape(B, Hp, Wp, dim).transpose(0, 3, 1, 2)  # NCHW
    return feats, cls_token


# ----------------------------------------------------------------------------- main
if __name__ == "__main__":
    # Synthetic small config consistent with 'vit_base_patch16_224' (patch_size=16).
    PATCH = 16
    CIN = 3
    B, H, W = 2, 64, 64          # -> 4x4 = 16 patch tokens + 1 cls (padded to 24)
    DIM = 32
    HEADS = 4
    DEPTH = 2
    MLP_HIDDEN = 64
    NUM_TOKENS = 1 + (H // PATCH) * (W // PATCH)

    key = jax.random.PRNGKey(0)
    kx, kp = jax.random.split(key)
    x = jax.random.normal(kx, (B, CIN, H, W), dtype=jnp.float32)  # NCHW, like PyTorch
    params = init_params(kp, cin=CIN, patch=PATCH, dim=DIM, heads=HEADS,
                         depth=DEPTH, mlp_hidden=MLP_HIDDEN, num_tokens=NUM_TOKENS)

    fwd = jax.jit(functools.partial(vit_wrapper_forward, patch=PATCH, dim=DIM, heads=HEADS))
    feats, cls_token = fwd(x, params)
    jax.block_until_ready(feats)
    jax.block_until_ready(cls_token)

    assert feats.shape == (B, DIM, H // PATCH, W // PATCH)
    assert cls_token.shape == (B, 1, DIM)
    print("KERNEL_OK")
</pallas_src>

<mosaic_0001>
module attributes {stable_mosaic.version = 11 : i64} {
  func.func @_linear_kernel(%arg0: i32, %arg1: memref<32x768xf32, #tpu.memory_space<vmem>>, %arg2: memref<768x32xf32, #tpu.memory_space<vmem>>, %arg3: memref<1x32xf32, #tpu.memory_space<vmem>>, %arg4: memref<32x32xf32, #tpu.memory_space<vmem>>) attributes {dimension_semantics = [#tpu.dimension_semantics<parallel>], iteration_bounds = array<i64: 1>, scalar_prefetch = 0 : i64, scratch_operands = 0 : i64, tpu.core_type = #tpu.core_type<tc>, window_params = [{transform_indices = @transform_0, window_bounds = array<i64: 32, 768>}, {pipeline_mode = #tpu.pipeline_mode<synchronous>, transform_indices = @transform_1, window_bounds = array<i64: 768, 32>}, {pipeline_mode = #tpu.pipeline_mode<synchronous>, transform_indices = @transform_2, window_bounds = array<i64: 1, 32>}, {transform_indices = @transform_3, window_bounds = array<i64: 32, 32>}]} {
    %c0 = arith.constant 0 : index
    %c0_0 = arith.constant 0 : index
    %0 = vector.load %arg1[%c0, %c0_0] : memref<32x768xf32, #tpu.memory_space<vmem>>, vector<32x768xf32>
    %c0_1 = arith.constant 0 : index
    %c0_2 = arith.constant 0 : index
    %1 = vector.load %arg2[%c0_1, %c0_2] : memref<768x32xf32, #tpu.memory_space<vmem>>, vector<768x32xf32>
    %cst = arith.constant dense<0.000000e+00> : vector<32x32xf32>
    %2 = tpu.matmul %0, %1, %cst {dimension_numbers = #tpu.dot_dimension_numbers<[1], [0], [0], [1], [0, 0, 1, 1], [], []>} : vector<32x768xf32>, vector<768x32xf32>, vector<32x32xf32> -> vector<32x32xf32>
    %c0_3 = arith.constant 0 : index
    %c0_4 = arith.constant 0 : index
    %3 = vector.load %arg3[%c0_3, %c0_4] : memref<1x32xf32, #tpu.memory_space<vmem>>, vector<1x32xf32>
    %4 = vector.broadcast %3 : vector<1x32xf32> to vector<32x32xf32>
    %5 = arith.addf %2, %4 : vector<32x32xf32>
    %c0_5 = arith.constant 0 : index
    %c0_6 = arith.constant 0 : index
    %6 = vector.load %arg4[%c0_5, %c0_6] : memref<32x32xf32, #tpu.memory_space<vmem>>, vector<32x32xf32>
    tpu.vector_store %arg4[%c0_5, %c0_6], %5 {strides = array<i32>} : memref<32x32xf32, #tpu.memory_space<vmem>>, vector<32x32xf32>,
    return
  }
  func.func @transform_0(%arg0: i32) -> (i32, i32) {
    %c0_i32 = arith.constant 0 : i32
    %c0_i32_0 = arith.constant 0 : i32
    return %arg0, %c0_i32 : i32, i32
  }
  func.func @transform_1(%arg0: i32) -> (i32, i32) {
    %c0_i32 = arith.constant 0 : i32
    %c0_i32_0 = arith.constant 0 : i32
    %c0_i32_1 = arith.constant 0 : i32
    return %c0_i32, %c0_i32_0 : i32, i32
  }
  func.func @transform_2(%arg0: i32) -> (i32, i32) {
    %c0_i32 = arith.constant 0 : i32
    %c0_i32_0 = arith.constant 0 : i32
    %c0_i32_1 = arith.constant 0 : i32
    return %c0_i32, %c0_i32_0 : i32, i32
  }
  func.func @transform_3(%arg0: i32) -> (i32, i32) {
    %c0_i32 = arith.constant 0 : i32
    %c0_i32_0 = arith.constant 0 : i32
    return %arg0, %c0_i32 : i32, i32
  }
}

module attributes {stable_mosaic.version = 11 : i64} {
  func.func @_ln_linear_kernel(%arg0: i32, %arg1: memref<48x32xf32, #tpu.memory_space<vmem>>, %arg2: memref<1x32xf32, #tpu.memory_space<vmem>>, %arg3: memref<1x32xf32, #tpu.memory_space<vmem>>, %arg4: memref<32x96xf32, #tpu.memory_space<vmem>>, %arg5: memref<1x96xf32, #tpu.memory_space<vmem>>, %arg6: memref<48x96xf32, #tpu.memory_space<vmem>>) attributes {dimension_semantics = [#tpu.dimension_semantics<parallel>], iteration_bounds = array<i64: 1>, scalar_prefetch = 0 : i64, scratch_operands = 0 : i64, tpu.core_type = #tpu.core_type<tc>, window_params = [{transform_indices = @transform_0, window_bounds = array<i64: 48, 32>}, {pipeline_mode = #tpu.pipeline_mode<synchronous>, transform_indices = @transform_1, window_bounds = array<i64: 1, 32>}, {pipeline_mode = #tpu.pipeline_mode<synchronous>, transform_indices = @transform_2, window_bounds = array<i64: 1, 32>}, {pipeline_mode = #tpu.pipeline_mode<synchronous>, transform_indices = @transform_3, window_bounds = array<i64: 32, 96>}, {pipeline_mode = #tpu.pipeline_mode<synchronous>, transform_indices = @transform_4, window_bounds = array<i64: 1, 96>}, {transform_indices = @transform_5, window_bounds = array<i64: 48, 96>}]} {
    %c0 = arith.constant 0 : index
    %c0_0 = arith.constant 0 : index
    %0 = vector.load %arg1[%c0, %c0_0] : memref<48x32xf32, #tpu.memory_space<vmem>>, vector<48x32xf32>
    %c0_1 = arith.constant 0 : index
    %c0_2 = arith.constant 0 : index
    %1 = vector.load %arg2[%c0_1, %c0_2] : memref<1x32xf32, #tpu.memory_space<vmem>>, vector<1x32xf32>
    %c0_3 = arith.constant 0 : index
    %c0_4 = arith.constant 0 : index
    %2 = vector.load %arg3[%c0_3, %c0_4] : memref<1x32xf32, #tpu.memory_space<vmem>>, vector<1x32xf32>
    %cst = arith.constant dense<0.000000e+00> : vector<48xf32>
    %3 = vector.multi_reduction <add>, %0, %cst [1] : vector<48x32xf32> to vector<48xf32>
    %4 = vector.shape_cast %3 : vector<48xf32> to vector<48x1xf32>
    %cst_5 = arith.constant 3.200000e+01 : f32
    %5 = vector.broadcast %cst_5 : f32 to vector<48x1xf32>
    %6 = arith.divf %4, %5 : vector<48x1xf32>
    %7 = vector.broadcast %6 : vector<48x1xf32> to vector<48x32xf32>
    %8 = arith.subf %0, %7 : vector<48x32xf32>
    %9 = arith.mulf %8, %8 : vector<48x32xf32>
    %cst_6 = arith.constant dense<0.000000e+00> : vector<48xf32>
    %10 = vector.multi_reduction <add>, %9, %cst_6 [1] : vector<48x32xf32> to vector<48xf32>
    %11 = vector.shape_cast %10 : vector<48xf32> to vector<48x1xf32>
    %cst_7 = arith.constant 3.200000e+01 : f32
    %12 = vector.broadcast %cst_7 : f32 to vector<48x1xf32>
    %13 = arith.divf %11, %12 : vector<48x1xf32>
    %14 = vector.broadcast %6 : vector<48x1xf32> to vector<48x32xf32>
    %15 = arith.subf %0, %14 : vector<48x32xf32>
    %cst_8 = arith.constant 9.99999997E-7 : f32
    %16 = vector.broadcast %cst_8 : f32 to vector<48x1xf32>
    %17 = arith.addf %13, %16 : vector<48x1xf32>
    %18 = math.rsqrt %17 : vector<48x1xf32>
    %19 = vector.broadcast %18 : vector<48x1xf32> to vector<48x32xf32>
    %20 = arith.mulf %15, %19 : vector<48x32xf32>
    %21 = vector.broadcast %1 : vector<1x32xf32> to vector<48x32xf32>
    %22 = arith.mulf %20, %21 : vector<48x32xf32>
    %23 = vector.broadcast %2 : vector<1x32xf32> to vector<48x32xf32>
    %24 = arith.addf %22, %23 : vector<48x32xf32>
    %c0_9 = arith.constant 0 : index
    %c0_10 = arith.constant 0 : index
    %25 = vector.load %arg4[%c0_9, %c0_10] : memref<32x96xf32, #tpu.memory_space<vmem>>, vector<32x96xf32>
    %cst_11 = arith.constant dense<0.000000e+00> : vector<48x96xf32>
    %26 = tpu.matmul %24, %25, %cst_11 {dimension_numbers = #tpu.dot_dimension_numbers<[1], [0], [0], [1], [0, 0, 1, 1], [], []>} : vector<48x32xf32>, vector<32x96xf32>, vector<48x96xf32> -> vector<48x96xf32>
    %c0_12 = arith.constant 0 : index
    %c0_13 = arith.constant 0 : index
    %27 = vector.load %arg5[%c0_12, %c0_13] : memref<1x96xf32, #tpu.memory_space<vmem>>, vector<1x96xf32>
    %28 = vector.broadcast %27 : vector<1x96xf32> to vector<48x96xf32>
    %29 = arith.addf %26, %28 : vector<48x96xf32>
    %c0_14 = arith.constant 0 : index
    %c0_15 = arith.constant 0 : index
    %30 = vector.load %arg6[%c0_14, %c0_15] : memref<48x96xf32, #tpu.memory_space<vmem>>, vector<48x96xf32>
    tpu.vector_store %arg6[%c0_14, %c0_15], %29 {strides = array<i32>} : memref<48x96xf32, #tpu.memory_space<vmem>>, vector<48x96xf32>,
    return
  }
  func.func @transform_0(%arg0: i32) -> (i32, i32) {
    %c0_i32 = arith.constant 0 : i32
    %c0_i32_0 = arith.constant 0 : i32
    return %arg0, %c0_i32 : i32, i32
  }
  func.func @transform_1(%arg0: i32) -> (i32, i32) {
    %c0_i32 = arith.constant 0 : i32
    %c0_i32_0 = arith.constant 0 : i32
    %c0_i32_1 = arith.constant 0 : i32
    return %c0_i32, %c0_i32_0 : i32, i32
  }
  func.func @transform_2(%arg0: i32) -> (i32, i32) {
    %c0_i32 = arith.constant 0 : i32
    %c0_i32_0 = arith.constant 0 : i32
    %c0_i32_1 = arith.constant 0 : i32
    return %c0_i32, %c0_i32_0 : i32, i32
  }
  func.func @transform_3(%arg0: i32) -> (i32, i32) {
    %c0_i32 = arith.constant 0 : i32
    %c0_i32_0 = arith.constant 0 : i32
    %c0_i32_1 = arith.constant 0 : i32
    return %c0_i32, %c0_i32_0 : i32, i32
  }
  func.func @transform_4(%arg0: i32) -> (i32, i32) {
    %c0_i32 = arith.constant 0 : i32
    %c0_i32_0 = arith.constant 0 : i32
    %c0_i32_1 = arith.constant 0 : i32
    return %c0_i32, %c0_i32_0 : i32, i32
  }
  func.func @transform_5(%arg0: i32) -> (i32, i32) {
    %c0_i32 = arith.constant 0 : i32
    %c0_i32_0 = arith.constant 0 : i32
    return %arg0, %c0_i32 : i32, i32
  }
}

module attributes {stable_mosaic.version = 11 : i64} {
  func.func @_attn_proj_kernel(%arg0: i32, %arg1: memref<1x24x96xf32, #tpu.memory_space<vmem>>, %arg2: memref<1x24x32xf32, #tpu.memory_space<vmem>>, %arg3: memref<32x32xf32, #tpu.memory_space<vmem>>, %arg4: memref<1x32xf32, #tpu.memory_space<vmem>>, %arg5: memref<1x24x32xf32, #tpu.memory_space<vmem>>) attributes {dimension_semantics = [#tpu.dimension_semantics<parallel>], iteration_bounds = array<i64: 2>, scalar_prefetch = 0 : i64, scratch_operands = 0 : i64, tpu.core_type = #tpu.core_type<tc>, window_params = [{transform_indices = @transform_0, window_bounds = array<i64: 1, 24, 96>}, {transform_indices = @transform_1, window_bounds = array<i64: 1, 24, 32>}, {pipeline_mode = #tpu.pipeline_mode<synchronous>, transform_indices = @transform_2, window_bounds = array<i64: 32, 32>}, {pipeline_mode = #tpu.pipeline_mode<synchronous>, transform_indices = @transform_3, window_bounds = array<i64: 1, 32>}, {transform_indices = @transform_4, window_bounds = array<i64: 1, 24, 32>}]} {
    %c0 = arith.constant 0 : index
    %c0_0 = arith.constant 0 : index
    %c0_1 = arith.constant 0 : index
    %0 = vector.load %arg1[%c0, %c0_0, %c0_1] : memref<1x24x96xf32, #tpu.memory_space<vmem>>, vector<1x24x96xf32>
    %1 = vector.shape_cast %0 : vector<1x24x96xf32> to vector<24x96xf32>
    %2 = tpu.iota {dimensions = array<i32: 1>} : vector<1x24xi32>
    %c17_i32 = arith.constant 17 : i32
    %3 = vector.broadcast %c17_i32 : i32 to vector<1x24xi32>
    %4 = arith.cmpi slt, %2, %3 : vector<1x24xi32>
    %5 = vector.extract_strided_slice %1 {offsets = [0, 0], sizes = [24, 8], strides = [1, 1]} : vector<24x96xf32> to vector<24x8xf32>
    %6 = vector.extract_strided_slice %1 {offsets = [0, 32], sizes = [24, 8], strides = [1, 1]} : vector<24x96xf32> to vector<24x8xf32>
    %7 = vector.extract_strided_slice %1 {offsets = [0, 64], sizes = [24, 8], strides = [1, 1]} : vector<24x96xf32> to vector<24x8xf32>
    %cst = arith.constant dense<0.000000e+00> : vector<24x24xf32>
    %8 = tpu.matmul %5, %6, %cst {dimension_numbers = #tpu.dot_dimension_numbers<[1], [1], [0], [0], [0, 0, 1, 0], [], []>} : vector<24x8xf32>, vector<24x8xf32>, vector<24x24xf32> -> vector<24x24xf32>
    %cst_2 = arith.constant -1.000000e+30 : f32
    %9 = vector.shape_cast %4 : vector<1x24xi1> to vector<1x24xi1>
    %10 = vector.broadcast %9 : vector<1x24xi1> to vector<24x24xi1>
    %11 = vector.broadcast %cst_2 : f32 to vector<24x24xf32>
    %12 = arith.select %10, %8, %11 : vector<24x24xi1>, vector<24x24xf32>
    %cst_3 = arith.constant dense<0xFF800000> : vector<24xf32>
    %13 = vector.multi_reduction <maximumf>, %12, %cst_3 [1] : vector<24x24xf32> to vector<24xf32>
    %14 = vector.shape_cast %13 : vector<24xf32> to vector<24x1xf32>
    %15 = vector.broadcast %14 : vector<24x1xf32> to vector<24x24xf32>
    %16 = arith.subf %12, %15 : vector<24x24xf32>
    %17 = math.exp %16 : vector<24x24xf32>
    %cst_4 = arith.constant dense<0.000000e+00> : vector<24xf32>
    %18 = vector.multi_reduction <add>, %17, %cst_4 [1] : vector<24x24xf32> to vector<24xf32>
    %19 = vector.shape_cast %18 : vector<24xf32> to vector<24x1xf32>
    %20 = tpu.reciprocal %19 {approx = true} : vector<24x1xf32> -> vector<24x1xf32>
    %21 = vector.broadcast %20 : vector<24x1xf32> to vector<24x24xf32>
    %22 = arith.mulf %17, %21 : vector<24x24xf32>
    %cst_5 = arith.constant dense<0.000000e+00> : vector<24x8xf32>
    %23 = tpu.matmul %22, %7, %cst_5 {dimension_numbers = #tpu.dot_dimension_numbers<[1], [0], [0], [1], [0, 0, 1, 1], [], []>} : vector<24x24xf32>, vector<24x8xf32>, vector<24x8xf32> -> vector<24x8xf32>
    %24 = vector.extract_strided_slice %1 {offsets = [0, 8], sizes = [24, 8], strides = [1, 1]} : vector<24x96xf32> to vector<24x8xf32>
    %25 = vector.extract_strided_slice %1 {offsets = [0, 40], sizes = [24, 8], strides = [1, 1]} : vector<24x96xf32> to vector<24x8xf32>
    %26 = vector.extract_strided_slice %1 {offsets = [0, 72], sizes = [24, 8], strides = [1, 1]} : vector<24x96xf32> to vector<24x8xf32>
    %cst_6 = arith.constant dense<0.000000e+00> : vector<24x24xf32>
    %27 = tpu.matmul %24, %25, %cst_6 {dimension_numbers = #tpu.dot_dimension_numbers<[1], [1], [0], [0], [0, 0, 1, 0], [], []>} : vector<24x8xf32>, vector<24x8xf32>, vector<24x24xf32> -> vector<24x24xf32>
    %cst_7 = arith.constant -1.000000e+30 : f32
    %28 = vector.shape_cast %4 : vector<1x24xi1> to vector<1x24xi1>
    %29 = vector.broadcast %28 : vector<1x24xi1> to vector<24x24xi1>
    %30 = vector.broadcast %cst_7 : f32 to vector<24x24xf32>
    %31 = arith.select %29, %27, %30 : vector<24x24xi1>, vector<24x24xf32>
    %cst_8 = arith.constant dense<0xFF800000> : vector<24xf32>
    %32 = vector.multi_reduction <maximumf>, %31, %cst_8 [1] : vector<24x24xf32> to vector<24xf32>
    %33 = vector.shape_cast %32 : vector<24xf32> to vector<24x1xf32>
    %34 = vector.broadcast %33 : vector<24x1xf32> to vector<24x24xf32>
    %35 = arith.subf %31, %34 : vector<24x24xf32>
    %36 = math.exp %35 : vector<24x24xf32>
    %cst_9 = arith.constant dense<0.000000e+00> : vector<24xf32>
    %37 = vector.multi_reduction <add>, %36, %cst_9 [1] : vector<24x24xf32> to vector<24xf32>
    %38 = vector.shape_cast %37 : vector<24xf32> to vector<24x1xf32>
    %39 = tpu.reciprocal %38 {approx = true} : vector<24x1xf32> -> vector<24x1xf32>
    %40 = vector.broadcast %39 : vector<24x1xf32> to vector<24x24xf32>
    %41 = arith.mulf %36, %40 : vector<24x24xf32>
    %cst_10 = arith.constant dense<0.000000e+00> : vector<24x8xf32>
    %42 = tpu.matmul %41, %26, %cst_10 {dimension_numbers = #tpu.dot_dimension_numbers<[1], [0], [0], [1], [0, 0, 1, 1], [], []>} : vector<24x24xf32>, vector<24x8xf32>, vector<24x8xf32> -> vector<24x8xf32>
    %43 = vector.extract_strided_slice %1 {offsets = [0, 16], sizes = [24, 8], strides = [1, 1]} : vector<24x96xf32> to vector<24x8xf32>
    %44 = vector.extract_strided_slice %1 {offsets = [0, 48], sizes = [24, 8], strides = [1, 1]} : vector<24x96xf32> to vector<24x8xf32>
    %45 = vector.extract_strided_slice %1 {offsets = [0, 80], sizes = [24, 8], strides = [1, 1]} : vector<24x96xf32> to vector<24x8xf32>
    %cst_11 = arith.constant dense<0.000000e+00> : vector<24x24xf32>
    %46 = tpu.matmul %43, %44, %cst_11 {dimension_numbers = #tpu.dot_dimension_numbers<[1], [1], [0], [0], [0, 0, 1, 0], [], []>} : vector<24x8xf32>, vector<24x8xf32>, vector<24x24xf32> -> vector<24x24xf32>
    %cst_12 = arith.constant -1.000000e+30 : f32
    %47 = vector.shape_cast %4 : vector<1x24xi1> to vector<1x24xi1>
    %48 = vector.broadcast %47 : vector<1x24xi1> to vector<24x24xi1>
    %49 = vector.broadcast %cst_12 : f32 to vector<24x24xf32>
    %50 = arith.select %48, %46, %49 : vector<24x24xi1>, vector<24x24xf32>
    %cst_13 = arith.constant dense<0xFF800000> : vector<24xf32>
    %51 = vector.multi_reduction <maximumf>, %50, %cst_13 [1] : vector<24x24xf32> to vector<24xf32>
    %52 = vector.shape_cast %51 : vector<24xf32> to vector<24x1xf32>
    %53 = vector.broadcast %52 : vector<24x1xf32> to vector<24x24xf32>
    %54 = arith.subf %50, %53 : vector<24x24xf32>
    %55 = math.exp %54 : vector<24x24xf32>
    %cst_14 = arith.constant dense<0.000000e+00> : vector<24xf32>
    %56 = vector.multi_reduction <add>, %55, %cst_14 [1] : vector<24x24xf32> to vector<24xf32>
    %57 = vector.shape_cast %56 : vector<24xf32> to vector<24x1xf32>
    %58 = tpu.reciprocal %57 {approx = true} : vector<24x1xf32> -> vector<24x1xf32>
    %59 = vector.broadcast %58 : vector<24x1xf32> to vector<24x24xf32>
    %60 = arith.mulf %55, %59 : vector<24x24xf32>
    %cst_15 = arith.constant dense<0.000000e+00> : vector<24x8xf32>
    %61 = tpu.matmul %60, %45, %cst_15 {dimension_numbers = #tpu.dot_dimension_numbers<[1], [0], [0], [1], [0, 0, 1, 1], [], []>} : vector<24x24xf32>, vector<24x8xf32>, vector<24x8xf32> -> vector<24x8xf32>
    %62 = vector.extract_strided_slice %1 {offsets = [0, 24], sizes = [24, 8], strides = [1, 1]} : vector<24x96xf32> to vector<24x8xf32>
    %63 = vector.extract_strided_slice %1 {offsets = [0, 56], sizes = [24, 8], strides = [1, 1]} : vector<24x96xf32> to vector<24x8xf32>
    %64 = vector.extract_strided_slice %1 {offsets = [0, 88], sizes = [24, 8], strides = [1, 1]} : vector<24x96xf32> to vector<24x8xf32>
    %cst_16 = arith.constant dense<0.000000e+00> : vector<24x24xf32>
    %65 = tpu.matmul %62, %63, %cst_16 {dimension_numbers = #tpu.dot_dimension_numbers<[1], [1], [0], [0], [0, 0, 1, 0], [], []>} : vector<24x8xf32>, vector<24x8xf32>, vector<24x24xf32> -> vector<24x24xf32>
    %cst_17 = arith.constant -1.000000e+30 : f32
    %66 = vector.shape_cast %4 : vector<1x24xi1> to vector<1x24xi1>
    %67 = vector.broadcast %66 : vector<1x24xi1> to vector<24x24xi1>
    %68 = vector.broadcast %cst_17 : f32 to vector<24x24xf32>
    %69 = arith.select %67, %65, %68 : vector<24x24xi1>, vector<24x24xf32>
    %cst_18 = arith.constant dense<0xFF800000> : vector<24xf32>
    %70 = vector.multi_reduction <maximumf>, %69, %cst_18 [1] : vector<24x24xf32> to vector<24xf32>
    %71 = vector.shape_cast %70 : vector<24xf32> to vector<24x1xf32>
    %72 = vector.broadcast %71 : vector<24x1xf32> to vector<24x24xf32>
    %73 = arith.subf %69, %72 : vector<24x24xf32>
    %74 = math.exp %73 : vector<24x24xf32>
    %cst_19 = arith.constant dense<0.000000e+00> : vector<24xf32>
    %75 = vector.multi_reduction <add>, %74, %cst_19 [1] : vector<24x24xf32> to vector<24xf32>
    %76 = vector.shape_cast %75 : vector<24xf32> to vector<24x1xf32>
    %77 = tpu.reciprocal %76 {approx = true} : vector<24x1xf32> -> vector<24x1xf32>
    %78 = vector.broadcast %77 : vector<24x1xf32> to vector<24x24xf32>
    %79 = arith.mulf %74, %78 : vector<24x24xf32>
    %cst_20 = arith.constant dense<0.000000e+00> : vector<24x8xf32>
    %80 = tpu.matmul %79, %64, %cst_20 {dimension_numbers = #tpu.dot_dimension_numbers<[1], [0], [0], [1], [0, 0, 1, 1], [], []>} : vector<24x24xf32>, vector<24x8xf32>, vector<24x8xf32> -> vector<24x8xf32>
    %81 = tpu.concatenate %23, %42, %61, %80 in 1 : vector<24x8xf32>, vector<24x8xf32>, vector<24x8xf32>, vector<24x8xf32> -> vector<24x32xf32>
    %c0_21 = arith.constant 0 : index
    %c0_22 = arith.constant 0 : index
    %82 = vector.load %arg3[%c0_21, %c0_22] : memref<32x32xf32, #tpu.memory_space<vmem>>, vector<32x32xf32>
    %cst_23 = arith.constant dense<0.000000e+00> : vector<24x32xf32>
    %83 = tpu.matmul %81, %82, %cst_23 {dimension_numbers = #tpu.dot_dimension_numbers<[1], [0], [0], [1], [0, 0, 1, 1], [], []>} : vector<24x32xf32>, vector<32x32xf32>, vector<24x32xf32> -> vector<24x32xf32>
    %c0_24 = arith.constant 0 : index
    %c0_25 = arith.constant 0 : index
    %84 = vector.load %arg4[%c0_24, %c0_25] : memref<1x32xf32, #tpu.memory_space<vmem>>, vector<1x32xf32>
    %85 = vector.broadcast %84 : vector<1x32xf32> to vector<24x32xf32>
    %86 = arith.addf %83, %85 : vector<24x32xf32>
    %c0_26 = arith.constant 0 : index
    %c0_27 = arith.constant 0 : index
    %c0_28 = arith.constant 0 : index
    %87 = vector.load %arg2[%c0_26, %c0_27, %c0_28] : memref<1x24x32xf32, #tpu.memory_space<vmem>>, vector<1x24x32xf32>
    %88 = vector.shape_cast %87 : vector<1x24x32xf32> to vector<24x32xf32>
    %89 = arith.addf %88, %86 : vector<24x32xf32>
    %c0_29 = arith.constant 0 : index
    %c0_30 = arith.constant 0 : index
    %c0_31 = arith.constant 0 : index
    %90 = vector.load %arg5[%c0_29, %c0_30, %c0_31] : memref<1x24x32xf32, #tpu.memory_space<vmem>>, vector<1x24x32xf32>
    %91 = vector.shape_cast %90 : vector<1x24x32xf32> to vector<24x32xf32>
    %92 = vector.shape_cast %89 : vector<24x32xf32> to vector<1x24x32xf32>
    tpu.vector_store %arg5[%c0_29, %c0_30, %c0_31], %92 {strides = array<i32>} : memref<1x24x32xf32, #tpu.memory_space<vmem>>, vector<1x24x32xf32>,
    return
  }
  func.func @transform_0(%arg0: i32) -> (i32, i32, i32) {
    %c0_i32 = arith.constant 0 : i32
    %c0_i32_0 = arith.constant 0 : i32
    %c0_i32_1 = arith.constant 0 : i32
    return %arg0, %c0_i32, %c0_i32_0 : i32, i32, i32
  }
  func.func @transform_1(%arg0: i32) -> (i32, i32, i32) {
    %c0_i32 = arith.constant 0 : i32
    %c0_i32_0 = arith.constant 0 : i32
    %c0_i32_1 = arith.constant 0 : i32
    return %arg0, %c0_i32, %c0_i32_0 : i32, i32, i32
  }
  func.func @transform_2(%arg0: i32) -> (i32, i32) {
    %c0_i32 = arith.constant 0 : i32
    %c0_i32_0 = arith.constant 0 : i32
    %c0_i32_1 = arith.constant 0 : i32
    return %c0_i32, %c0_i32_0 : i32, i32
  }
  func.func @transform_3(%arg0: i32) -> (i32, i32) {
    %c0_i32 = arith.constant 0 : i32
    %c0_i32_0 = arith.constant 0 : i32
    %c0_i32_1 = arith.constant 0 : i32
    return %c0_i32, %c0_i32_0 : i32, i32
  }
  func.func @transform_4(%arg0: i32) -> (i32, i32, i32) {
    %c0_i32 = arith.constant 0 : i32
    %c0_i32_0 = arith.constant 0 : i32
    %c0_i32_1 = arith.constant 0 : i32
    return %arg0, %c0_i32, %c0_i32_0 : i32, i32, i32
  }
}

module attributes {stable_mosaic.version = 11 : i64} {
  func.func @_ln_kernel(%arg0: i32, %arg1: memref<48x32xf32, #tpu.memory_space<vmem>>, %arg2: memref<1x32xf32, #tpu.memory_space<vmem>>, %arg3: memref<1x32xf32, #tpu.memory_space<vmem>>, %arg4: memref<48x32xf32, #tpu.memory_space<vmem>>) attributes {dimension_semantics = [#tpu.dimension_semantics<parallel>], iteration_bounds = array<i64: 1>, scalar_prefetch = 0 : i64, scratch_operands = 0 : i64, tpu.core_type = #tpu.core_type<tc>, window_params = [{transform_indices = @transform_0, window_bounds = array<i64: 48, 32>}, {pipeline_mode = #tpu.pipeline_mode<synchronous>, transform_indices = @transform_1, window_bounds = array<i64: 1, 32>}, {pipeline_mode = #tpu.pipeline_mode<synchronous>, transform_indices = @transform_2, window_bounds = array<i64: 1, 32>}, {transform_indices = @transform_3, window_bounds = array<i64: 48, 32>}]} {
    %c0 = arith.constant 0 : index
    %c0_0 = arith.constant 0 : index
    %0 = vector.load %arg1[%c0, %c0_0] : memref<48x32xf32, #tpu.memory_space<vmem>>, vector<48x32xf32>
    %c0_1 = arith.constant 0 : index
    %c0_2 = arith.constant 0 : index
    %1 = vector.load %arg2[%c0_1, %c0_2] : memref<1x32xf32, #tpu.memory_space<vmem>>, vector<1x32xf32>
    %c0_3 = arith.constant 0 : index
    %c0_4 = arith.constant 0 : index
    %2 = vector.load %arg3[%c0_3, %c0_4] : memref<1x32xf32, #tpu.memory_space<vmem>>, vector<1x32xf32>
    %cst = arith.constant dense<0.000000e+00> : vector<48xf32>
    %3 = vector.multi_reduction <add>, %0, %cst [1] : vector<48x32xf32> to vector<48xf32>
    %4 = vector.shape_cast %3 : vector<48xf32> to vector<48x1xf32>
    %cst_5 = arith.constant 3.200000e+01 : f32
    %5 = vector.broadcast %cst_5 : f32 to vector<48x1xf32>
    %6 = arith.divf %4, %5 : vector<48x1xf32>
    %7 = vector.broadcast %6 : vector<48x1xf32> to vector<48x32xf32>
    %8 = arith.subf %0, %7 : vector<48x32xf32>
    %9 = arith.mulf %8, %8 : vector<48x32xf32>
    %cst_6 = arith.constant dense<0.000000e+00> : vector<48xf32>
    %10 = vector.multi_reduction <add>, %9, %cst_6 [1] : vector<48x32xf32> to vector<48xf32>
    %11 = vector.shape_cast %10 : vector<48xf32> to vector<48x1xf32>
    %cst_7 = arith.constant 3.200000e+01 : f32
    %12 = vector.broadcast %cst_7 : f32 to vector<48x1xf32>
    %13 = arith.divf %11, %12 : vector<48x1xf32>
    %14 = vector.broadcast %6 : vector<48x1xf32> to vector<48x32xf32>
    %15 = arith.subf %0, %14 : vector<48x32xf32>
    %cst_8 = arith.constant 9.99999997E-7 : f32
    %16 = vector.broadcast %cst_8 : f32 to vector<48x1xf32>
    %17 = arith.addf %13, %16 : vector<48x1xf32>
    %18 = math.rsqrt %17 : vector<48x1xf32>
    %19 = vector.broadcast %18 : vector<48x1xf32> to vector<48x32xf32>
    %20 = arith.mulf %15, %19 : vector<48x32xf32>
    %21 = vector.broadcast %1 : vector<1x32xf32> to vector<48x32xf32>
    %22 = arith.mulf %20, %21 : vector<48x32xf32>
    %23 = vector.broadcast %2 : vector<1x32xf32> to vector<48x32xf32>
    %24 = arith.addf %22, %23 : vector<48x32xf32>
    %c0_9 = arith.constant 0 : index
    %c0_10 = arith.constant 0 : index
    %25 = vector.load %arg4[%c0_9, %c0_10] : memref<48x32xf32, #tpu.memory_space<vmem>>, vector<48x32xf32>
    tpu.vector_store %arg4[%c0_9, %c0_10], %24 {strides = array<i32>} : memref<48x32xf32, #tpu.memory_space<vmem>>, vector<48x32xf32>,
    return
  }
  func.func @transform_0(%arg0: i32) -> (i32, i32) {
    %c0_i32 = arith.constant 0 : i32
    %c0_i32_0 = arith.constant 0 : i32
    return %arg0, %c0_i32 : i32, i32
  }
  func.func @transform_1(%arg0: i32) -> (i32, i32) {
    %c0_i32 = arith.constant 0 : i32
    %c0_i32_0 = arith.constant 0 : i32
    %c0_i32_1 = arith.constant 0 : i32
    return %c0_i32, %c0_i32_0 : i32, i32
  }
  func.func @transform_2(%arg0: i32) -> (i32, i32) {
    %c0_i32 = arith.constant 0 : i32
    %c0_i32_0 = arith.constant 0 : i32
    %c0_i32_1 = arith.constant 0 : i32
    return %c0_i32, %c0_i32_0 : i32, i32
  }
  func.func @transform_3(%arg0: i32) -> (i32, i32) {
    %c0_i32 = arith.constant 0 : i32
    %c0_i32_0 = arith.constant 0 : i32
    return %arg0, %c0_i32 : i32, i32
  }
}

module attributes {stable_mosaic.version = 11 : i64} {
  func.func @_ln_mlp_kernel(%arg0: i32, %arg1: memref<48x32xf32, #tpu.memory_space<vmem>>, %arg2: memref<1x32xf32, #tpu.memory_space<vmem>>, %arg3: memref<1x32xf32, #tpu.memory_space<vmem>>, %arg4: memref<32x64xf32, #tpu.memory_space<vmem>>, %arg5: memref<1x64xf32, #tpu.memory_space<vmem>>, %arg6: memref<64x32xf32, #tpu.memory_space<vmem>>, %arg7: memref<1x32xf32, #tpu.memory_space<vmem>>, %arg8: memref<48x32xf32, #tpu.memory_space<vmem>>) attributes {dimension_semantics = [#tpu.dimension_semantics<parallel>], iteration_bounds = array<i64: 1>, scalar_prefetch = 0 : i64, scratch_operands = 0 : i64, tpu.core_type = #tpu.core_type<tc>, window_params = [{transform_indices = @transform_0, window_bounds = array<i64: 48, 32>}, {pipeline_mode = #tpu.pipeline_mode<synchronous>, transform_indices = @transform_1, window_bounds = array<i64: 1, 32>}, {pipeline_mode = #tpu.pipeline_mode<synchronous>, transform_indices = @transform_2, window_bounds = array<i64: 1, 32>}, {pipeline_mode = #tpu.pipeline_mode<synchronous>, transform_indices = @transform_3, window_bounds = array<i64: 32, 64>}, {pipeline_mode = #tpu.pipeline_mode<synchronous>, transform_indices = @transform_4, window_bounds = array<i64: 1, 64>}, {pipeline_mode = #tpu.pipeline_mode<synchronous>, transform_indices = @transform_5, window_bounds = array<i64: 64, 32>}, {pipeline_mode = #tpu.pipeline_mode<synchronous>, transform_indices = @transform_6, window_bounds = array<i64: 1, 32>}, {transform_indices = @transform_7, window_bounds = array<i64: 48, 32>}]} {
    %c0 = arith.constant 0 : index
    %c0_0 = arith.constant 0 : index
    %0 = vector.load %arg1[%c0, %c0_0] : memref<48x32xf32, #tpu.memory_space<vmem>>, vector<48x32xf32>
    %c0_1 = arith.constant 0 : index
    %c0_2 = arith.constant 0 : index
    %1 = vector.load %arg2[%c0_1, %c0_2] : memref<1x32xf32, #tpu.memory_space<vmem>>, vector<1x32xf32>
    %c0_3 = arith.constant 0 : index
    %c0_4 = arith.constant 0 : index
    %2 = vector.load %arg3[%c0_3, %c0_4] : memref<1x32xf32, #tpu.memory_space<vmem>>, vector<1x32xf32>
    %cst = arith.constant dense<0.000000e+00> : vector<48xf32>
    %3 = vector.multi_reduction <add>, %0, %cst [1] : vector<48x32xf32> to vector<48xf32>
    %4 = vector.shape_cast %3 : vector<48xf32> to vector<48x1xf32>
    %cst_5 = arith.constant 3.200000e+01 : f32
    %5 = vector.broadcast %cst_5 : f32 to vector<48x1xf32>
    %6 = arith.divf %4, %5 : vector<48x1xf32>
    %7 = vector.broadcast %6 : vector<48x1xf32> to vector<48x32xf32>
    %8 = arith.subf %0, %7 : vector<48x32xf32>
    %9 = arith.mulf %8, %8 : vector<48x32xf32>
    %cst_6 = arith.constant dense<0.000000e+00> : vector<48xf32>
    %10 = vector.multi_reduction <add>, %9, %cst_6 [1] : vector<48x32xf32> to vector<48xf32>
    %11 = vector.shape_cast %10 : vector<48xf32> to vector<48x1xf32>
    %cst_7 = arith.constant 3.200000e+01 : f32
    %12 = vector.broadcast %cst_7 : f32 to vector<48x1xf32>
    %13 = arith.divf %11, %12 : vector<48x1xf32>
    %14 = vector.broadcast %6 : vector<48x1xf32> to vector<48x32xf32>
    %15 = arith.subf %0, %14 : vector<48x32xf32>
    %cst_8 = arith.constant 9.99999997E-7 : f32
    %16 = vector.broadcast %cst_8 : f32 to vector<48x1xf32>
    %17 = arith.addf %13, %16 : vector<48x1xf32>
    %18 = math.rsqrt %17 : vector<48x1xf32>
    %19 = vector.broadcast %18 : vector<48x1xf32> to vector<48x32xf32>
    %20 = arith.mulf %15, %19 : vector<48x32xf32>
    %21 = vector.broadcast %1 : vector<1x32xf32> to vector<48x32xf32>
    %22 = arith.mulf %20, %21 : vector<48x32xf32>
    %23 = vector.broadcast %2 : vector<1x32xf32> to vector<48x32xf32>
    %24 = arith.addf %22, %23 : vector<48x32xf32>
    %c0_9 = arith.constant 0 : index
    %c0_10 = arith.constant 0 : index
    %25 = vector.load %arg4[%c0_9, %c0_10] : memref<32x64xf32, #tpu.memory_space<vmem>>, vector<32x64xf32>
    %cst_11 = arith.constant dense<0.000000e+00> : vector<48x64xf32>
    %26 = tpu.matmul %24, %25, %cst_11 {dimension_numbers = #tpu.dot_dimension_numbers<[1], [0], [0], [1], [0, 0, 1, 1], [], []>} : vector<48x32xf32>, vector<32x64xf32>, vector<48x64xf32> -> vector<48x64xf32>
    %c0_12 = arith.constant 0 : index
    %c0_13 = arith.constant 0 : index
    %27 = vector.load %arg5[%c0_12, %c0_13] : memref<1x64xf32, #tpu.memory_space<vmem>>, vector<1x64xf32>
    %28 = vector.broadcast %27 : vector<1x64xf32> to vector<48x64xf32>
    %29 = arith.addf %26, %28 : vector<48x64xf32>
    %30 = arith.mulf %29, %29 : vector<48x64xf32>
    %31 = arith.mulf %29, %30 : vector<48x64xf32>
    %cst_14 = arith.constant 4.471500e-02 : f32
    %32 = vector.broadcast %cst_14 : f32 to vector<48x64xf32>
    %33 = arith.mulf %32, %31 : vector<48x64xf32>
    %34 = arith.addf %29, %33 : vector<48x64xf32>
    %cst_15 = arith.constant 0.797884583 : f32
    %35 = vector.broadcast %cst_15 : f32 to vector<48x64xf32>
    %36 = arith.mulf %35, %34 : vector<48x64xf32>
    %37 = math.tanh %36 : vector<48x64xf32>
    %cst_16 = arith.constant 1.000000e+00 : f32
    %38 = vector.broadcast %cst_16 : f32 to vector<48x64xf32>
    %39 = arith.addf %38, %37 : vector<48x64xf32>
    %cst_17 = arith.constant 5.000000e-01 : f32
    %40 = vector.broadcast %cst_17 : f32 to vector<48x64xf32>
    %41 = arith.mulf %40, %39 : vector<48x64xf32>
    %42 = arith.mulf %29, %41 : vector<48x64xf32>
    %c0_18 = arith.constant 0 : index
    %c0_19 = arith.constant 0 : index
    %43 = vector.load %arg6[%c0_18, %c0_19] : memref<64x32xf32, #tpu.memory_space<vmem>>, vector<64x32xf32>
    %cst_20 = arith.constant dense<0.000000e+00> : vector<48x32xf32>
    %44 = tpu.matmul %42, %43, %cst_20 {dimension_numbers = #tpu.dot_dimension_numbers<[1], [0], [0], [1], [0, 0, 1, 1], [], []>} : vector<48x64xf32>, vector<64x32xf32>, vector<48x32xf32> -> vector<48x32xf32>
    %c0_21 = arith.constant 0 : index
    %c0_22 = arith.constant 0 : index
    %45 = vector.load %arg7[%c0_21, %c0_22] : memref<1x32xf32, #tpu.memory_space<vmem>>, vector<1x32xf32>
    %46 = vector.broadcast %45 : vector<1x32xf32> to vector<48x32xf32>
    %47 = arith.addf %44, %46 : vector<48x32xf32>
    %48 = arith.addf %0, %47 : vector<48x32xf32>
    %c0_23 = arith.constant 0 : index
    %c0_24 = arith.constant 0 : index
    %49 = vector.load %arg8[%c0_23, %c0_24] : memref<48x32xf32, #tpu.memory_space<vmem>>, vector<48x32xf32>
    tpu.vector_store %arg8[%c0_23, %c0_24], %48 {strides = array<i32>} : memref<48x32xf32, #tpu.memory_space<vmem>>, vector<48x32xf32>,
    return
  }
  func.func @transform_0(%arg0: i32) -> (i32, i32) {
    %c0_i32 = arith.constant 0 : i32
    %c0_i32_0 = arith.constant 0 : i32
    return %arg0, %c0_i32 : i32, i32
  }
  func.func @transform_1(%arg0: i32) -> (i32, i32) {
    %c0_i32 = arith.constant 0 : i32
    %c0_i32_0 = arith.constant 0 : i32
    %c0_i32_1 = arith.constant 0 : i32
    return %c0_i32, %c0_i32_0 : i32, i32
  }
  func.func @transform_2(%arg0: i32) -> (i32, i32) {
    %c0_i32 = arith.constant 0 : i32
    %c0_i32_0 = arith.constant 0 : i32
    %c0_i32_1 = arith.constant 0 : i32
    return %c0_i32, %c0_i32_0 : i32, i32
  }
  func.func @transform_3(%arg0: i32) -> (i32, i32) {
    %c0_i32 = arith.constant 0 : i32
    %c0_i32_0 = arith.constant 0 : i32
    %c0_i32_1 = arith.constant 0 : i32
    return %c0_i32, %c0_i32_0 : i32, i32
  }
  func.func @transform_4(%arg0: i32) -> (i32, i32) {
    %c0_i32 = arith.constant 0 : i32
    %c0_i32_0 = arith.constant 0 : i32
    %c0_i32_1 = arith.constant 0 : i32
    return %c0_i32, %c0_i32_0 : i32, i32
  }
  func.func @transform_5(%arg0: i32) -> (i32, i32) {
    %c0_i32 = arith.constant 0 : i32
    %c0_i32_0 = arith.constant 0 : i32
    %c0_i32_1 = arith.constant 0 : i32
    return %c0_i32, %c0_i32_0 : i32, i32
  }
  func.func @transform_6(%arg0: i32) -> (i32, i32) {
    %c0_i32 = arith.constant 0 : i32
    %c0_i32_0 = arith.constant 0 : i32
    %c0_i32_1 = arith.constant 0 : i32
    return %c0_i32, %c0_i32_0 : i32, i32
  }
  func.func @transform_7(%arg0: i32) -> (i32, i32) {
    %c0_i32 = arith.constant 0 : i32
    %c0_i32_0 = arith.constant 0 : i32
    return %arg0, %c0_i32 : i32, i32
  }
}

</mosaic_0001>

<bundles_post_ra>
// kernel: vit_wrapper_forward.8
= control target key start
LH: loop header
LB: loop body
LE: loop exit
PB: predicated region body
PF: predicated region fallthrough
CT: control target
= control target key end

     0   :  { %vm312_vm0 = vcmask 261120   ;;  %s753_s1 = inlined_call_operand.vmem [shape: f32[768,32], index: 1, kind: input, shape index: {}]   ;;  %s754_s0 = inlined_call_operand.vmem [shape: f32[32,768], index: 0, kind: input, shape index: {}]   ;;  %s755_s2 = inlined_call_operand.vmem [shape: f32[1,32], index: 2, kind: input, shape index: {}]   ;;  %s756_s3 = inlined_call_operand.vmem [shape: f32[32,32], index: 3, kind: output, shape index: {}]  }
   0x1   :  { %v53_v0 = vld [vmem:[%s753_s1 + $0x78] sm:$0xff]  ;;  %v52_v2 = vld [vmem:[%s753_s1 + $0x70] sm:$0xff]  ;;  %v51_v6 = vld [vmem:[%s753_s1 + $0x68] sm:$0xff] }
   0x2   :  { %v85_v1 = vld [vmem:[%s753_s1 + $0x178] sm:$0xff]  ;;  %138 = vmatpush.msra.mxu0 %v53_v0  ;;  %v84_v4 = vld [vmem:[%s753_s1 + $0x170] sm:$0xff]  ;;  %v83_v8 = vld [vmem:[%s753_s1 + $0x168] sm:$0xff] }
   0x3   :  { %196 = vmatpush.msra.mxu2 %v85_v1  ;;  %v69_v3 = vld [vmem:[%s753_s1 + $0xf8] sm:$0xff]  ;;  %v68_v7 = vld [vmem:[%s753_s1 + $0xf0] sm:$0xff]  ;;  %v67_v10 = vld [vmem:[%s753_s1 + $0xe8] sm:$0xff] }
   0x4   :  { %v101_v5 = vld [vmem:[%s753_s1 + $0x1f8] sm:$0xff]  ;;  %167 = vmatpush.msra.mxu1 %v69_v3  ;;  %139 = vmatpush.msra.mxu0 %v52_v2  ;;  %v100_v9 = vld [vmem:[%s753_s1 + $0x1f0] sm:$0xff]  ;;  %v50_v11 = vld [vmem:[%s753_s1 + $0x60] sm:$0xff] }
   0x5   :  { %225 = vmatpush.msra.mxu3 %v101_v5  ;;  %197 = vmatpush.msra.mxu2 %v84_v4  ;;  %v82_v12 = vld [vmem:[%s753_s1 + $0x160] sm:$0xff]  ;;  %v99_v13 = vld [vmem:[%s753_s1 + $0x1e8] sm:$0xff]  ;;  %v49_v16 = vld [vmem:[%s753_s1 + $0x58] sm:$0xff] }
   0x6   :  { %168 = vmatpush.msra.mxu1 %v68_v7  ;;  %140 = vmatpush.msra.mxu0 %v51_v6  ;;  %v66_v14 = vld [vmem:[%s753_s1 + $0xe0] sm:$0xff]  ;;  %v81_v17 = vld [vmem:[%s753_s1 + $0x158] sm:$0xff]  ;;  %v48_v20 = vld [vmem:[%s753_s1 + $0x50] sm:$0xff] }
   0x7   :  { %226 = vmatpush.msra.mxu3 %v100_v9  ;;  %198 = vmatpush.msra.mxu2 %v83_v8  ;;  %v98_v15 = vld [vmem:[%s753_s1 + $0x1e0] sm:$0xff]  ;;  %v65_v18 = vld [vmem:[%s753_s1 + $0xd8] sm:$0xff]  ;;  %v80_v21 = vld [vmem:[%s753_s1 + $0x150] sm:$0xff] }
   0x8   :  { %169 = vmatpush.msra.mxu1 %v67_v10  ;;  %141 = vmatpush.msra.mxu0 %v50_v11  ;;  %v97_v19 = vld [vmem:[%s753_s1 + $0x1d8] sm:$0xff]  ;;  %v64_v22 = vld [vmem:[%s753_s1 + $0xd0] sm:$0xff]  ;;  %v47_v24 = vld [vmem:[%s753_s1 + $0x48] sm:$0xff] }
   0x9   :  { %227 = vmatpush.msra.mxu3 %v99_v13  ;;  %199 = vmatpush.msra.mxu2 %v82_v12  ;;  %v96_v23 = vld [vmem:[%s753_s1 + $0x1d0] sm:$0xff]  ;;  %v79_v25 = vld [vmem:[%s753_s1 + $0x148] sm:$0xff]  ;;  %v46_v28 = vld [vmem:[%s753_s1 + $0x40] sm:$0xff] }
   0xa   :  { %170 = vmatpush.msra.mxu1 %v66_v14  ;;  %142 = vmatpush.msra.mxu0 %v49_v16  ;;  %v63_v26 = vld [vmem:[%s753_s1 + $0xc8] sm:$0xff]  ;;  %v78_v29 = vld [vmem:[%s753_s1 + $0x140] sm:$0xff]  ;;  %v45_v32 = vld [vmem:[%s753_s1 + $0x38] sm:$0xff] }
   0xb   :  { %228 = vmatpush.msra.mxu3 %v98_v15  ;;  %200 = vmatpush.msra.mxu2 %v81_v17  ;;  %v95_v27 = vld [vmem:[%s753_s1 + $0x1c8] sm:$0xff]  ;;  %v62_v30 = vld [vmem:[%s753_s1 + $0xc0] sm:$0xff]  ;;  %v77_v33 = vld [vmem:[%s753_s1 + $0x138] sm:$0xff] }
   0xc   :  { %171 = vmatpush.msra.mxu1 %v65_v18  ;;  %143 = vmatpush.msra.mxu0 %v48_v20  ;;  %v94_v31 = vld [vmem:[%s753_s1 + $0x1c0] sm:$0xff]  ;;  %v61_v34 = vld [vmem:[%s753_s1 + $0xb8] sm:$0xff]  ;;  %v44_v36 = vld [vmem:[%s753_s1 + $0x30] sm:$0xff] }
   0xd   :  { %229 = vmatpush.msra.mxu3 %v97_v19  ;;  %201 = vmatpush.msra.mxu2 %v80_v21  ;;  %v93_v35 = vld [vmem:[%s753_s1 + $0x1b8] sm:$0xff]  ;;  %v76_v37 = vld [vmem:[%s753_s1 + $0x130] sm:$0xff]  ;;  %v43_v40 = vld [vmem:[%s753_s1 + $0x28] sm:$0xff] }
   0xe   :  { %172 = vmatpush.msra.mxu1 %v64_v22  ;;  %144 = vmatpush.msra.mxu0 %v47_v24  ;;  %v60_v38 = vld [vmem:[%s753_s1 + $0xb0] sm:$0xff]  ;;  %v75_v41 = vld [vmem:[%s753_s1 + $0x128] sm:$0xff]  ;;  %v42_v44 = vld [vmem:[%s753_s1 + $0x20] sm:$0xff] }
   0xf   :  { %230 = vmatpush.msra.mxu3 %v96_v23  ;;  %202 = vmatpush.msra.mxu2 %v79_v25  ;;  %v92_v39 = vld [vmem:[%s753_s1 + $0x1b0] sm:$0xff]  ;;  %v59_v42 = vld [vmem:[%s753_s1 + $0xa8] sm:$0xff]  ;;  %v74_v45 = vld [vmem:[%s753_s1 + $0x120] sm:$0xff] }
  0x10   :  { %173 = vmatpush.msra.mxu1 %v63_v26  ;;  %145 = vmatpush.msra.mxu0 %v46_v28  ;;  %v91_v43 = vld [vmem:[%s753_s1 + $0x1a8] sm:$0xff]  ;;  %v58_v46 = vld [vmem:[%s753_s1 + $0xa0] sm:$0xff]  ;;  %v41_v48 = vld [vmem:[%s753_s1 + $0x18] sm:$0xff] }
  0x11   :  { %231 = vmatpush.msra.mxu3 %v95_v27  ;;  %203 = vmatpush.msra.mxu2 %v78_v29  ;;  %v90_v47 = vld [vmem:[%s753_s1 + $0x1a0] sm:$0xff]  ;;  %v73_v49 = vld [vmem:[%s753_s1 + $0x118] sm:$0xff]  ;;  %v40_v52 = vld [vmem:[%s753_s1 + $0x10] sm:$0xff] }
  0x12   :  { %174 = vmatpush.msra.mxu1 %v62_v30  ;;  %146 = vmatpush.msra.mxu0 %v45_v32  ;;  %v57_v50 = vld [vmem:[%s753_s1 + $0x98] sm:$0xff]  ;;  %v72_v53 = vld [vmem:[%s753_s1 + $0x110] sm:$0xff]  ;;  %v39_v56 = vld [vmem:[%s753_s1 + $0x8] sm:$0xff] }
  0x13   :  { %232 = vmatpush.msra.mxu3 %v94_v31  ;;  %204 = vmatpush.msra.mxu2 %v77_v33  ;;  %v89_v51 = vld [vmem:[%s753_s1 + $0x198] sm:$0xff]  ;;  %v56_v54 = vld [vmem:[%s753_s1 + $0x90] sm:$0xff]  ;;  %v71_v57 = vld [vmem:[%s753_s1 + $0x108] sm:$0xff] }
  0x14   :  { %175 = vmatpush.msra.mxu1 %v61_v34  ;;  %147 = vmatpush.msra.mxu0 %v44_v36  ;;  %v88_v55 = vld [vmem:[%s753_s1 + $0x190] sm:$0xff]  ;;  %v55_v58 = vld [vmem:[%s753_s1 + $0x88] sm:$0xff]  ;;  %v38_v60 = vld [vmem:[%s753_s1] sm:$0xff] }
  0x15   :  { %233 = vmatpush.msra.mxu3 %v93_v35  ;;  %205 = vmatpush.msra.mxu2 %v76_v37  ;;  %v87_v59 = vld [vmem:[%s753_s1 + $0x188] sm:$0xff]  ;;  %v70_v61 = vld [vmem:[%s753_s1 + $0x100] sm:$0xff]  ;;  %v16_v63 = vld [vmem:[%s754_s0 + $0x10] sm:$0xff] }
  0x16   :  { %176 = vmatpush.msra.mxu1 %v60_v38  ;;  %148 = vmatpush.msra.mxu0 %v43_v40  ;;  %v14_v62 = vld [vmem:[%s754_s0] sm:$0xff]  ;;  %v117_v0 = vld [vmem:[%s753_s1 + $0x278] sm:$0xff]  ;;  %v15_v3 = vld [vmem:[%s754_s0 + $0x8] sm:$0xff] }
  0x17   :  { %234 = vmatpush.msra.mxu3 %v92_v39  ;;  %206 = vmatpush.msra.mxu2 %v75_v41  ;;  %v54_v1 = vld [vmem:[%s753_s1 + $0x80] sm:$0xff]  ;;  %v17_v4 = vld [vmem:[%s754_s0 + $0x18] sm:$0xff]  ;;  %v116_v5 = vld [vmem:[%s753_s1 + $0x270] sm:$0xff] }
  0x18   :  { %177 = vmatpush.msra.mxu1 %v59_v42  ;;  %149 = vmatpush.msra.mxu0 %v42_v44  ;;  %v86_v2 = vld [vmem:[%s753_s1 + $0x180] sm:$0xff]  ;;  %v133_v6 = vld [vmem:[%s753_s1 + $0x2f8] sm:$0xff]  ;;  %v115_v7 = vld [vmem:[%s753_s1 + $0x268] sm:$0xff] }
  0x19   :  { %235 = vmatpush.msra.mxu3 %v91_v43  ;;  %207 = vmatpush.msra.mxu2 %v74_v45  ;;  %v132_v8 = vld [vmem:[%s753_s1 + $0x2f0] sm:$0xff]  ;;  %v114_v9 = vld [vmem:[%s753_s1 + $0x260] sm:$0xff]  ;;  %v131_v10 = vld [vmem:[%s753_s1 + $0x2e8] sm:$0xff] }
  0x1a   :  { %178 = vmatpush.msra.mxu1 %v58_v46  ;;  %150 = vmatpush.msra.mxu0 %v41_v48  ;;  %v20_v11 = vld [vmem:[%s754_s0 + $0x30] sm:$0xff]  ;;  %v22_v12 = vld [vmem:[%s754_s0 + $0x40] sm:$0xff]  ;;  %v113_v13 = vld [vmem:[%s753_s1 + $0x258] sm:$0xff] }
  0x1b   :  { %236 = vmatpush.msra.mxu3 %v90_v47  ;;  %208 = vmatpush.msra.mxu2 %v73_v49  ;;  %v130_v14 = vld [vmem:[%s753_s1 + $0x2e0] sm:$0xff]  ;;  %v21_v15 = vld [vmem:[%s754_s0 + $0x38] sm:$0xff]  ;;  %v23_v16 = vld [vmem:[%s754_s0 + $0x48] sm:$0xff] }
  0x1c   :  { %179 = vmatpush.msra.mxu1 %v57_v50  ;;  %151 = vmatpush.msra.mxu0 %v40_v52  ;;  %v112_v17 = vld [vmem:[%s753_s1 + $0x250] sm:$0xff]  ;;  %v129_v18 = vld [vmem:[%s753_s1 + $0x2d8] sm:$0xff]  ;;  %v111_v19 = vld [vmem:[%s753_s1 + $0x248] sm:$0xff] }
  0x1d   :  { %237 = vmatpush.msra.mxu3 %v89_v51  ;;  %209 = vmatpush.msra.mxu2 %v72_v53  ;;  %v128_v20 = vld [vmem:[%s753_s1 + $0x2d0] sm:$0xff]  ;;  %v110_v21 = vld [vmem:[%s753_s1 + $0x240] sm:$0xff]  ;;  %v127_v22 = vld [vmem:[%s753_s1 + $0x2c8] sm:$0xff] }
  0x1e   :  { %180 = vmatpush.msra.mxu1 %v56_v54  ;;  %152 = vmatpush.msra.mxu0 %v39_v56  ;;  %v26_v23 = vld [vmem:[%s754_s0 + $0x60] sm:$0xff]  ;;  %v28_v24 = vld [vmem:[%s754_s0 + $0x70] sm:$0xff]  ;;  %v109_v25 = vld [vmem:[%s753_s1 + $0x238] sm:$0xff] }
  0x1f   :  { %238 = vmatpush.msra.mxu3 %v88_v55  ;;  %210 = vmatpush.msra.mxu2 %v71_v57  ;;  %v126_v26 = vld [vmem:[%s753_s1 + $0x2c0] sm:$0xff]  ;;  %v27_v27 = vld [vmem:[%s754_s0 + $0x68] sm:$0xff]  ;;  %v29_v28 = vld [vmem:[%s754_s0 + $0x78] sm:$0xff] }
  0x20   :  { %181 = vmatpush.msra.mxu1 %v55_v58  ;;  %153 = vmatpush.msra.mxu0 %v38_v60  ;;  %v108_v29 = vld [vmem:[%s753_s1 + $0x230] sm:$0xff]  ;;  %v125_v30 = vld [vmem:[%s753_s1 + $0x2b8] sm:$0xff]  ;;  %v107_v31 = vld [vmem:[%s753_s1 + $0x228] sm:$0xff] }
  0x21   :  { %239 = vmatpush.msra.mxu3 %v87_v59  ;;  %211 = vmatpush.msra.mxu2 %v70_v61  ;;  %v124_v32 = vld [vmem:[%s753_s1 + $0x2b0] sm:$0xff]  ;;  %v106_v33 = vld [vmem:[%s753_s1 + $0x220] sm:$0xff]  ;;  %v123_v34 = vld [vmem:[%s753_s1 + $0x2a8] sm:$0xff] }
  0x22   :  { %154 = vmatmul.f32.vlgmr.msra.gmra.mxu0 %v14_v62  ;;  %212 = vmatmul.f32.vlgmr.msra.gmra.mxu2 %v16_v63  ;;  %v32_v35 = vld [vmem:[%s754_s0 + $0x90] sm:$0xff]  ;;  %v34_v36 = vld [vmem:[%s754_s0 + $0xa0] sm:$0xff]  ;;  %v105_v37 = vld [vmem:[%s753_s1 + $0x218] sm:$0xff] }
  0x23   :  { %321 = vmatpush.msrb.mxu2 %v117_v0  ;;  %182 = vmatpush.msra.mxu1 %v54_v1  ;;  %v122_v38 = vld [vmem:[%s753_s1 + $0x2a0] sm:$0xff]  ;;  %v33_v39 = vld [vmem:[%s754_s0 + $0x98] sm:$0xff]  ;;  %v35_v40 = vld [vmem:[%s754_s0 + $0xa8] sm:$0xff] }
  0x24   :  { %240 = vmatpush.msra.mxu3 %v86_v2  ;;  %254 = vmatpush.msrb.mxu0 %v117_v0  ;;  %v104_v41 = vld [vmem:[%s753_s1 + $0x210] sm:$0xff]  ;;  %v121_v42 = vld [vmem:[%s753_s1 + $0x298] sm:$0xff]  ;;  %v103_v43 = vld [vmem:[%s753_s1 + $0x208] sm:$0xff] }
  0x25   :  { %183 = vmatmul.f32.vlgmr.msra.gmra.mxu1 %v15_v3  ;;  %241 = vmatmul.f32.vlgmr.msra.gmra.mxu3 %v17_v4  ;;  %v120_v44 = vld [vmem:[%s753_s1 + $0x290] sm:$0xff]  ;;  %v102_v45 = vld [vmem:[%s753_s1 + $0x200] sm:$0xff]  ;;  %v119_v46 = vld [vmem:[%s753_s1 + $0x288] sm:$0xff] }
  0x26   :  { %322 = vmatpush.msrb.mxu2 %v116_v5  ;;  %337 = vmatpush.msrb.mxu3 %v133_v6  ;;  %v18_v47 = vld [vmem:[%s754_s0 + $0x20] sm:$0xff]  ;;  %v19_v50 = vld [vmem:[%s754_s0 + $0x28] sm:$0xff]  ;;  %v24_v52 = vld [vmem:[%s754_s0 + $0x50] sm:$0xff] }
  0x27   :  { %255 = vmatpush.msrb.mxu0 %v116_v5  ;;  %283 = vmatpush.msrb.mxu1 %v133_v6  ;;  %v30_v48 = vld [vmem:[%s754_s0 + $0x80] sm:$0xff]  ;;  %v31_v51 = vld [vmem:[%s754_s0 + $0x88] sm:$0xff]  ;;  %v36_v53 = vld [vmem:[%s754_s0 + $0xb0] sm:$0xff] }
  0x28   :  { %323 = vmatpush.msrb.mxu2 %v115_v7  ;;  %338 = vmatpush.msrb.mxu3 %v132_v8  ;;  %v118_v49 = vld [vmem:[%s753_s1 + $0x280] sm:$0xff]  ;;  %v25_v54 = vld [vmem:[%s754_s0 + $0x58] sm:$0xff] }
  0x29   :  { %256 = vmatpush.msrb.mxu0 %v115_v7  ;;  %284 = vmatpush.msrb.mxu1 %v132_v8  ;;  %v37_v55 = vld [vmem:[%s754_s0 + $0xb8] sm:$0xff]  ;;  %v353_v1 = vld [vmem:[%s755_s2] ss:$0 sm:$0xff] }
  0x2a   :  { %324 = vmatpush.msrb.mxu2 %v114_v9  ;;  %339 = vmatpush.msrb.mxu3 %v131_v10 }
  0x2b   :  { %257 = vmatpush.msrb.mxu0 %v114_v9  ;;  %285 = vmatpush.msrb.mxu1 %v131_v10 }
  0x2c   :  { %157 = vmatmul.f32.gmra.mxu0 %v20_v11  ;;  %215 = vmatmul.f32.gmra.mxu2 %v22_v12 }
  0x2d   :  { %325 = vmatpush.msrb.mxu2 %v113_v13  ;;  %340 = vmatpush.msrb.mxu3 %v130_v14 }
  0x2e   :  { %258 = vmatpush.msrb.mxu0 %v113_v13  ;;  %286 = vmatpush.msrb.mxu1 %v130_v14 }
  0x2f   :  { %186 = vmatmul.f32.gmra.mxu1 %v21_v15  ;;  %244 = vmatmul.f32.gmra.mxu3 %v23_v16 }
  0x30   :  { %326 = vmatpush.msrb.mxu2 %v112_v17  ;;  %341 = vmatpush.msrb.mxu3 %v129_v18 }
  0x31   :  { %259 = vmatpush.msrb.mxu0 %v112_v17  ;;  %287 = vmatpush.msrb.mxu1 %v129_v18 }
  0x32   :  { %327 = vmatpush.msrb.mxu2 %v111_v19  ;;  %342 = vmatpush.msrb.mxu3 %v128_v20 }
  0x33   :  { %260 = vmatpush.msrb.mxu0 %v111_v19  ;;  %288 = vmatpush.msrb.mxu1 %v128_v20 }
  0x34   :  { %328 = vmatpush.msrb.mxu2 %v110_v21  ;;  %343 = vmatpush.msrb.mxu3 %v127_v22 }
  0x35   :  { %261 = vmatpush.msrb.mxu0 %v110_v21  ;;  %289 = vmatpush.msrb.mxu1 %v127_v22 }
  0x36   :  { %160 = vmatmul.f32.gmra.mxu0 %v26_v23  ;;  %218 = vmatmul.f32.gmra.mxu2 %v28_v24 }
  0x37   :  { %329 = vmatpush.msrb.mxu2 %v109_v25  ;;  %344 = vmatpush.msrb.mxu3 %v126_v26 }
  0x38   :  { %262 = vmatpush.msrb.mxu0 %v109_v25  ;;  %290 = vmatpush.msrb.mxu1 %v126_v26 }
  0x39   :  { %189 = vmatmul.f32.gmra.mxu1 %v27_v27  ;;  %247 = vmatmul.f32.gmra.mxu3 %v29_v28 }
  0x3a   :  { %330 = vmatpush.msrb.mxu2 %v108_v29  ;;  %345 = vmatpush.msrb.mxu3 %v125_v30 }
  0x3b   :  { %263 = vmatpush.msrb.mxu0 %v108_v29  ;;  %291 = vmatpush.msrb.mxu1 %v125_v30 }
  0x3c   :  { %331 = vmatpush.msrb.mxu2 %v107_v31  ;;  %346 = vmatpush.msrb.mxu3 %v124_v32 }
  0x3d   :  { %264 = vmatpush.msrb.mxu0 %v107_v31  ;;  %292 = vmatpush.msrb.mxu1 %v124_v32 }
  0x3e   :  { %332 = vmatpush.msrb.mxu2 %v106_v33  ;;  %347 = vmatpush.msrb.mxu3 %v123_v34 }
  0x3f   :  { %265 = vmatpush.msrb.mxu0 %v106_v33  ;;  %293 = vmatpush.msrb.mxu1 %v123_v34 }
  0x40   :  { %163 = vmatmul.f32.gmra.mxu0 %v32_v35  ;;  %221 = vmatmul.f32.gmra.mxu2 %v34_v36 }
  0x41   :  { %333 = vmatpush.msrb.mxu2 %v105_v37  ;;  %348 = vmatpush.msrb.mxu3 %v122_v38 }
  0x42   :  { %266 = vmatpush.msrb.mxu0 %v105_v37  ;;  %294 = vmatpush.msrb.mxu1 %v122_v38 }
  0x43   :  { %192 = vmatmul.f32.gmra.mxu1 %v33_v39  ;;  %250 = vmatmul.f32.gmra.mxu3 %v35_v40 }
  0x44   :  { %334 = vmatpush.msrb.mxu2 %v104_v41  ;;  %349 = vmatpush.msrb.mxu3 %v121_v42 }
  0x45   :  { %267 = vmatpush.msrb.mxu0 %v104_v41  ;;  %295 = vmatpush.msrb.mxu1 %v121_v42 }
  0x46   :  { %335 = vmatpush.msrb.mxu2 %v103_v43  ;;  %350 = vmatpush.msrb.mxu3 %v120_v44 }
  0x47   :  { %268 = vmatpush.msrb.mxu0 %v103_v43  ;;  %296 = vmatpush.msrb.mxu1 %v120_v44 }
  0x48   :  { %336 = vmatpush.msrb.mxu2 %v102_v45  ;;  %351 = vmatpush.msrb.mxu3 %v119_v46 }
  0x49   :  { %269 = vmatpush.msrb.mxu0 %v102_v45  ;;  %297 = vmatpush.msrb.mxu1 %v119_v46 }
  0x4a   :  { %270 = vmatmul.f32.vlgmr.msrb.gmra.mxu0 %v18_v47  ;;  %276 = vmatmul.f32.vlgmr.msrb.gmra.mxu2 %v30_v48 }
  0x4b   :  { %352 = vmatpush.msrb.mxu3 %v118_v49  ;;  %298 = vmatpush.msrb.mxu1 %v118_v49 }
  0x4c   :  { %299 = vmatmul.f32.vlgmr.msrb.gmra.mxu1 %v19_v50  ;;  %305 = vmatmul.f32.vlgmr.msrb.gmra.mxu3 %v31_v51 }
  0x52   :  { %273 = vmatmul.f32.gmra.mxu0 %v24_v52  ;;  %279 = vmatmul.f32.gmra.mxu2 %v36_v53 }
  0x54   :  { %302 = vmatmul.f32.gmra.mxu1 %v25_v54  ;;  %308 = vmatmul.f32.gmra.mxu3 %v37_v55 }
  0x9f   :  { %v155_v56 = vpop.f32.mrf.mxu0 }
  0xa0   :  { %v156_v4 = vadd.f32 %v353_v1, %v155_v56 }
  0xa2   :  { %v184_v57 = vpop.f32.mrf.mxu1 }
  0xa3   :  { %v185_v7 = vadd.f32 %v184_v57, %v156_v4 }
  0xa5   :  { %v213_v58 = vpop.f32.mrf.mxu2 }
  0xa6   :  { %v214_v10 = vadd.f32 %v213_v58, %v185_v7 }
  0xa8   :  { %v242_v59 = vpop.f32.mrf.mxu3 }
  0xa9   :  { %v158_v60 = vpop.f32.mrf.mxu0  ;;  %v243_v14 = vadd.f32 %v242_v59, %v214_v10 }
  0xaa   :  { %v159_v11 = vadd.f32 %v353_v1, %v158_v60 }
  0xac   :  { %v187_v61 = vpop.f32.mrf.mxu1 }
  0xad   :  { %v188_v15 = vadd.f32 %v187_v61, %v159_v11 }
  0xaf   :  { %v216_v62 = vpop.f32.mrf.mxu2 }
  0xb0   :  { %v217_v22 = vadd.f32 %v216_v62, %v188_v15 }
  0xb2   :  { %v245_v63 = vpop.f32.mrf.mxu3 }
  0xb3   :  { %v161_v0 = vpop.f32.mrf.mxu0  ;;  %v246_v27 = vadd.f32 %v245_v63, %v217_v22 }
  0xb4   :  { %v162_v8 = vadd.f32 %v353_v1, %v161_v0 }
  0xb6   :  { %v190_v2 = vpop.f32.mrf.mxu1 }
  0xb7   :  { %v191_v13 = vadd.f32 %v190_v2, %v162_v8 }
  0xb9   :  { %v219_v3 = vpop.f32.mrf.mxu2 }
  0xba   :  { %v220_v18 = vadd.f32 %v219_v3, %v191_v13 }
  0xbc   :  { %v248_v5 = vpop.f32.mrf.mxu3 }
  0xbd   :  { %v164_v6 = vpop.f32.mrf.mxu0  ;;  %v249_v24 = vadd.f32 %v248_v5, %v220_v18 }
  0xbe   :  { %v165_v19 = vadd.f32 %v353_v1, %v164_v6 }
  0xc0   :  { %v193_v9 = vpop.f32.mrf.mxu1 }
  0xc1   :  { %v194_v25 = vadd.f32 %v193_v9, %v165_v19 }
  0xc3   :  { %v222_v12 = vpop.f32.mrf.mxu2 }
  0xc4   :  { %v223_v31 = vadd.f32 %v222_v12, %v194_v25 }
  0xc6   :  { %v251_v16 = vpop.f32.mrf.mxu3 }
  0xc7   :  { %v271_v17 = vpop.f32.mrf.mxu0  ;;  %v252_v36 = vadd.f32 %v251_v16, %v223_v31 }
  0xc8   :  { %v272_v20 = vadd.f32 %v271_v17, %v243_v14 }
  0xc9   :  { %v300_v21 = vpop.f32.mrf.mxu1 }
  0xca   :  { %v301_v23 = vadd.f32 %v300_v21, %v272_v20 }
  0xcc   :  { %313 = vst.msk [vmem:[%s756_s3] sm:$0xff] %vm312_vm0, %v301_v23 }
  0xcd   :  { %v277_v26 = vpop.f32.mrf.mxu2 }
  0xce   :  { %v278_v28 = vadd.f32 %v277_v26, %v249_v24 }
  0xcf   :  { %v274_v29 = vpop.f32.mrf.mxu0  ;;  %v306_v30 = vpop.f32.mrf.mxu3 }
  0xd0   :  { %v275_v32 = vadd.f32 %v274_v29, %v246_v27  ;;  %v307_v33 = vadd.f32 %v306_v30, %v278_v28 }
  0xd1   :  { %v303_v34 = vpop.f32.mrf.mxu1 }
  0xd2   :  { %315 = vst.msk [vmem:[%s756_s3 + $0x10] sm:$0xff] %vm312_vm0, %v307_v33  ;;  %v304_v35 = vadd.f32 %v303_v34, %v275_v32 }
  0xd4   :  { %314 = vst.msk [vmem:[%s756_s3 + $0x8] sm:$0xff] %vm312_vm0, %v304_v35 }
  0xd5   :  { %v280_v37 = vpop.f32.mrf.mxu2 }
  0xd6   :  { %v281_v38 = vadd.f32 %v280_v37, %v252_v36 }
  0xd7   :  { %v309_v39 = vpop.f32.mrf.mxu3 }
  0xd8   :  { %v310_v40 = vadd.f32 %v309_v39, %v281_v38 }
  0xda   :  { %316 = vst.msk [vmem:[%s756_s3 + $0x18] sm:$0xff] %vm312_vm0, %v310_v40 }

// kernel: vit_wrapper_forward.9
= control target key start
LH: loop header
LB: loop body
LE: loop exit
PB: predicated region body
PF: predicated region fallthrough
CT: control target
= control target key end

     0   :  { %vm28_vm0 = vcmask 261120   ;;  %v294_v12 = vmov 32.0   ;;  %s468_s0 = inlined_call_operand.vmem [shape: f32[48,32], index: 0, kind: input, shape index: {}]   ;;  %s469_s1 = inlined_call_operand.vmem [shape: f32[1,32], index: 1, kind: input, shape index: {}]   ;;  %s470_s2 = inlined_call_operand.vmem [shape: f32[1,32], index: 2, kind: input, shape index: {}]   ;;  %s471_s4 = inlined_call_operand.vmem [shape: f32[1,96], index: 4, kind: input, shape index: {}]   ;;  %s472_s3 = inlined_call_operand.vmem [shape: f32[32,96], index: 3, kind: input, shape index: {}]   ;;  %s473_s5 = inlined_call_operand.vmem [shape: f32[48,96], index: 5, kind: output, shape index: {}]  }
   0x1   :  { %v24_v0 = vld [vmem:[%s468_s0 + $0x20] sm:$0xff]  ;;  %v23_v1 = vld [vmem:[%s468_s0 + $0x18] sm:$0xff]  ;;  %v25_v6 = vld [vmem:[%s468_s0 + $0x28] sm:$0xff]  ;;  %280 = vrcp.f32 %v294_v12 }
   0x2   :  { %v20_v2 = vld [vmem:[%s468_s0] sm:$0xff]  ;;  %v41_v3 = vsel %vm28_vm0, %v24_v0, 0.0  ;;  %v38_v4 = vsel %vm28_vm0, %v23_v1, 0.0  ;;  %v21_v7 = vld [vmem:[%s468_s0 + $0x8] sm:$0xff]  ;;  %v22_v8 = vld [vmem:[%s468_s0 + $0x10] sm:$0xff]  ;;  %v44_v9 = vsel %vm28_vm0, %v25_v6, 0.0 }
   0x3   :  { %v29_v5 = vsel %vm28_vm0, %v20_v2, 0.0  ;;  %42 = vadd.xlane.f32.xlu0 %v41_v3  ;;  %39 = vadd.xlane.f32.xlu1 %v38_v4  ;;  %v32_v10 = vsel %vm28_vm0, %v21_v7, 0.0  ;;  %v35_v11 = vsel %vm28_vm0, %v22_v8, 0.0  ;;  %v189_v49 = vld [vmem:[%s472_s3 + $0x18] sm:$0xff]  ;;  %v188_v50 = vld [vmem:[%s472_s3 + $0x10] sm:$0xff]  ;;  %v187_v51 = vld [vmem:[%s472_s3 + $0x8] sm:$0xff] }
   0x4   :  { %30 = vadd.xlane.f32.xlu2 %v29_v5  ;;  %265 = vmatpush.msra.mxu2 %v189_v49  ;;  %v186_v52 = vld [vmem:[%s472_s3] sm:$0xff] }
   0x5   :  { %266 = vmatpush.msra.mxu3 %v189_v49  ;;  %264 = vmatpush.msra.mxu1 %v189_v49 }
   0x6   :  { %224 = vmatpush.msra.mxu0 %v189_v49  ;;  %268 = vmatpush.msra.mxu2 %v188_v50 }
   0x7   :  { %v281_v13 = vpop.eup %280  ;;  %269 = vmatpush.msra.mxu3 %v188_v50  ;;  %267 = vmatpush.msra.mxu1 %v188_v50 }
   0x8   :  { %v48_v14 = vmul.f32 32.0, %v281_v13  ;;  %vm52_vm1 = vweird.f32 %v281_v13  ;;  %225 = vmatpush.msra.mxu0 %v188_v50  ;;  %271 = vmatpush.msra.mxu2 %v187_v51 }
   0x9   :  { %272 = vmatpush.msra.mxu3 %v187_v51  ;;  %270 = vmatpush.msra.mxu1 %v187_v51 }
   0xa   :  { %v49_v15 = vsub.f32 1.0, %v48_v14  ;;  %226 = vmatpush.msra.mxu0 %v187_v51  ;;  %274 = vmatpush.msra.mxu2 %v186_v52 }
   0xb   :  { %45 = vadd.xlane.f32.xlu1 %v44_v9  ;;  %33 = vadd.xlane.f32.xlu0 %v32_v10 }
   0xc   :  { %36 = vadd.xlane.f32.xlu2 %v35_v11  ;;  %v50_v16 = vmul.f32 %v281_v13, %v49_v15  ;;  %275 = vmatpush.msra.mxu3 %v186_v52 }
   0xd   :  { %273 = vmatpush.msra.mxu1 %v186_v52  ;;  %227 = vmatpush.msra.mxu0 %v186_v52 }
   0xe   :  { %v51_v17 = vadd.f32 %v281_v13, %v50_v16 }
  0x10   :  { %v349_v18 = vsel %vm52_vm1, %v281_v13, %v51_v17 }
  0x76   :  { %v43_v19 = vpop.xlane.xlu0 %42  ;;  %v40_v20 = vpop.xlane.xlu1 %39 }
  0x77   :  { %v58_v21 = vmul.f32 %v349_v18, %v43_v19  ;;  %v57_v22 = vmul.f32 %v349_v18, %v40_v20  ;;  %v31_v23 = vpop.xlane.xlu2 %30 }
  0x78   :  { %v54_v36 = vmul.f32 %v349_v18, %v31_v23 }
  0x79   :  { %v353_v24 = vsub.f32 %v24_v0, %v58_v21  ;;  %v355_v25 = vsub.f32 %v23_v1, %v57_v22 }
  0x7a   :  { %v379_v43 = vsub.f32 %v20_v2, %v54_v36 }
  0x7b   :  { %v70_v26 = vmul.f32 %v353_v24, %v353_v24  ;;  %v69_v27 = vmul.f32 %v355_v25, %v355_v25 }
  0x7c   :  { %v66_v47 = vmul.f32 %v379_v43, %v379_v43 }
  0x7d   :  { %v84_v28 = vsel %vm28_vm0, %v70_v26, 0.0  ;;  %v81_v29 = vsel %vm28_vm0, %v69_v27, 0.0 }
  0x7e   :  { %v46_v30 = vpop.xlane.xlu1 %45  ;;  %85 = vadd.xlane.f32.xlu0 %v84_v28  ;;  %v34_v31 = vpop.xlane.xlu0 %33  ;;  %82 = vadd.xlane.f32.xlu2 %v81_v29  ;;  %v72_v48 = vsel %vm28_vm0, %v66_v47, 0.0 }
  0x7f   :  { %v59_v32 = vmul.f32 %v349_v18, %v46_v30  ;;  %v55_v33 = vmul.f32 %v349_v18, %v34_v31  ;;  %v37_v34 = vpop.xlane.xlu2 %36 }
  0x80   :  { %v56_v35 = vmul.f32 %v349_v18, %v37_v34 }
  0x81   :  { %v367_v37 = vsub.f32 %v25_v6, %v59_v32  ;;  %v369_v38 = vsub.f32 %v21_v7, %v55_v33  ;;  %v278_v32 = vld [vmem:[%s470_s2] ss:$0 sm:$0xff] }
  0x82   :  { %v371_v39 = vsub.f32 %v22_v8, %v56_v35 }
  0x83   :  { %v71_v40 = vmul.f32 %v367_v37, %v367_v37  ;;  %v67_v41 = vmul.f32 %v369_v38, %v369_v38 }
  0x84   :  { %v68_v42 = vmul.f32 %v371_v39, %v371_v39 }
  0x85   :  { %v87_v44 = vsel %vm28_vm0, %v71_v40, 0.0  ;;  %v75_v45 = vsel %vm28_vm0, %v67_v41, 0.0 }
  0x86   :  { %88 = vadd.xlane.f32.xlu0 %v87_v44  ;;  %76 = vadd.xlane.f32.xlu1 %v75_v45  ;;  %v78_v46 = vsel %vm28_vm0, %v68_v42, 0.0 }
  0x87   :  { %79 = vadd.xlane.f32.xlu2 %v78_v46 }
  0x8e   :  { %73 = vadd.xlane.f32.xlu1 %v72_v48 }
  0xf1   :  { %v86_v53 = vpop.xlane.xlu0 %85  ;;  %v83_v54 = vpop.xlane.xlu2 %82 }
  0xf2   :  { %v94_v55 = vmul.f32 %v86_v53, %v349_v18  ;;  %v93_v56 = vmul.f32 %v83_v54, %v349_v18 }
  0xf4   :  { %v100_v57 = vadd.f32 1e-06, %v94_v55  ;;  %v99_v58 = vadd.f32 1e-06, %v93_v56 }
  0xf6   :  { %282 = vrsqrt.f32 %v100_v57  ;;  %vm148_vm4 = vweird.f32 %v100_v57  ;;  %vm138_vm6 = vweird.f32 %v99_v58 }
  0xf7   :  { %284 = vrsqrt.f32 %v99_v58 }
  0xf9   :  { %v77_v59 = vpop.xlane.xlu1 %76  ;;  %v89_v60 = vpop.xlane.xlu0 %88 }
  0xfa   :  { %v91_v61 = vmul.f32 %v77_v59, %v349_v18  ;;  %v95_v62 = vmul.f32 %v89_v60, %v349_v18  ;;  %v80_v63 = vpop.xlane.xlu2 %79 }
  0xfb   :  { %v92_v0 = vmul.f32 %v80_v63, %v349_v18 }
  0xfc   :  { %v283_v1 = vpop.eup %282  ;;  %v97_v2 = vadd.f32 1e-06, %v91_v61  ;;  %v404_v3 = vadd.f32 1e-06, %v95_v62 }
  0xfd   :  { %v285_v4 = vpop.eup %284  ;;  %v143_v5 = vmul.f32 %v283_v1, %v100_v57  ;;  %v406_v6 = vadd.f32 1e-06, %v92_v0  ;;  %vm149_vm2 = vweird.f32 %v283_v1 }
  0xfe   :  { %v133_v7 = vmul.f32 %v285_v4, %v99_v58  ;;  %286 = vrsqrt.f32 %v97_v2  ;;  %vm139_vm3 = vweird.f32 %v285_v4  ;;  %vm150_vm5 = vmor %vm148_vm4, %vm149_vm2  ;;  %vm118_vm8 = vweird.f32 %v97_v2 }
  0xff   :  { %v144_v8 = vmul.f32 %v283_v1, %v143_v5  ;;  %288 = vrsqrt.f32 %v404_v3  ;;  %vm140_vm7 = vmor %vm138_vm6, %vm139_vm3  ;;  %vm128_vm11 = vweird.f32 %v406_v6  ;;  %vm158_vm14 = vweird.f32 %v404_v3 }
 0x100   :  { %v134_v9 = vmul.f32 %v285_v4, %v133_v7  ;;  %290 = vrsqrt.f32 %v406_v6 }
 0x101   :  { %v145_v10 = vmul.f32 0.5, %v144_v8  ;;  %v74_v11 = vpop.xlane.xlu1 %73 }
 0x102   :  { %v135_v12 = vmul.f32 0.5, %v134_v9  ;;  %v90_v13 = vmul.f32 %v74_v11, %v349_v18  ;;  %v277_v18 = vld [vmem:[%s469_s1] ss:$0 sm:$0xff] }
 0x103   :  { %v146_v14 = vsub.f32 1.5, %v145_v10 }
 0x104   :  { %v287_v15 = vpop.eup %286  ;;  %v136_v16 = vsub.f32 1.5, %v135_v12  ;;  %v411_v17 = vadd.f32 1e-06, %v90_v13 }
 0x105   :  { %v289_v19 = vpop.eup %288  ;;  %v147_v20 = vmul.f32 %v283_v1, %v146_v14  ;;  %v113_v21 = vmul.f32 %v287_v15, %v97_v2  ;;  %vm119_vm9 = vweird.f32 %v287_v15 }
 0x106   :  { %v291_v22 = vpop.eup %290  ;;  %v137_v23 = vmul.f32 %v285_v4, %v136_v16  ;;  %v153_v26 = vmul.f32 %v289_v19, %v404_v3  ;;  %292 = vrsqrt.f32 %v411_v17  ;;  %vm159_vm10 = vweird.f32 %v289_v19  ;;  %vm120_vm13 = vmor %vm118_vm8, %vm119_vm9 }
 0x107   :  { %v151_v27 = vsel %vm150_vm5, %v283_v1, %v147_v20  ;;  %v114_v28 = vmul.f32 %v287_v15, %v113_v21  ;;  %v123_v29 = vmul.f32 %v291_v22, %v406_v6  ;;  %vm129_vm12 = vweird.f32 %v291_v22  ;;  %vm160_vm15 = vmor %vm158_vm14, %vm159_vm10 }
 0x108   :  { %v141_v30 = vsel %vm140_vm7, %v285_v4, %v137_v23  ;;  %v154_v31 = vmul.f32 %v289_v19, %v153_v26  ;;  %v166_v33 = vmul.f32 %v151_v27, %v353_v24  ;;  %vm130_vm1 = vmor %vm128_vm11, %vm129_vm12  ;;  %vm108_vm3 = vweird.f32 %v411_v17 }
 0x109   :  { %v115_v34 = vmul.f32 0.5, %v114_v28  ;;  %v124_v35 = vmul.f32 %v291_v22, %v123_v29  ;;  %v165_v36 = vmul.f32 %v141_v30, %v355_v25  ;;  %vm247_vm5 = vcmask 785408  }
 0x10a   :  { %v155_v40 = vmul.f32 0.5, %v154_v31  ;;  %v175_v41 = vmul.f32 %v277_v18, %v166_v33 }
 0x10b   :  { %v116_v42 = vsub.f32 1.5, %v115_v34  ;;  %v125_v44 = vmul.f32 0.5, %v124_v35  ;;  %v174_v45 = vmul.f32 %v277_v18, %v165_v36 }
 0x10c   :  { %v293_v46 = vpop.eup %292  ;;  %v156_v47 = vsub.f32 1.5, %v155_v40  ;;  %v184_v48 = vadd.f32 %v278_v32, %v175_v41 }
 0x10d   :  { %v117_v49 = vmul.f32 %v287_v15, %v116_v42  ;;  %v126_v50 = vsub.f32 1.5, %v125_v44  ;;  %v103_v24 = vmul.f32 %v293_v46, %v411_v17  ;;  %v183_v51 = vadd.f32 %v278_v32, %v174_v45 }
 0x10e   :  { %v157_v25 = vmul.f32 %v289_v19, %v156_v47  ;;  %262 = vmatmul.msk.f32.vlgmr.msra.gmra.mxu3 %vm28_vm0, %v184_v48  ;;  %vm109_vm2 = vweird.f32 %v293_v46 }
 0x10f   :  { %v121_v52 = vsel %vm120_vm13, %v287_v15, %v117_v49  ;;  %v127_v53 = vmul.f32 %v291_v22, %v126_v50  ;;  %v104_v54 = vmul.f32 %v293_v46, %v103_v24  ;;  %261 = vmatmul.msk.f32.vlgmr.msra.gmra.mxu2 %vm28_vm0, %v183_v51  ;;  %vm110_vm4 = vmor %vm108_vm3, %vm109_vm2 }
 0x110   :  { %v161_v55 = vsel %vm160_vm15, %v289_v19, %v157_v25  ;;  %v163_v56 = vmul.f32 %v121_v52, %v369_v38 }
 0x111   :  { %v131_v57 = vsel %vm130_vm1, %v291_v22, %v127_v53  ;;  %v105_v58 = vmul.f32 0.5, %v104_v54  ;;  %v167_v59 = vmul.f32 %v161_v55, %v367_v37 }
 0x112   :  { %v172_v60 = vmul.f32 %v277_v18, %v163_v56  ;;  %v164_v0 = vmul.f32 %v131_v57, %v371_v39  ;;  %v279_v39 = vld [vmem:[%s471_s4] ss:$0 sm:$0xff] }
 0x113   :  { %v106_v61 = vsub.f32 1.5, %v105_v58  ;;  %v176_v62 = vmul.f32 %v277_v18, %v167_v59 }
 0x114   :  { %v181_v63 = vadd.f32 %v278_v32, %v172_v60  ;;  %v173_v37 = vmul.f32 %v277_v18, %v164_v0 }
 0x115   :  { %v107_v1 = vmul.f32 %v293_v46, %v106_v61  ;;  %v185_v2 = vadd.f32 %v278_v32, %v176_v62 }
 0x116   :  { %259 = vmatmul.msk.f32.vlgmr.msra.gmra.mxu1 %vm28_vm0, %v181_v63  ;;  %v182_v6 = vadd.f32 %v278_v32, %v173_v37 }
 0x117   :  { %v111_v3 = vsel %vm110_vm4, %v293_v46, %v107_v1  ;;  %263 = vmatmul.msk.f32.gmra.mxu3 %vm28_vm0, %v185_v2 }
 0x118   :  { %v162_v38 = vmul.f32 %v111_v3, %v379_v43 }
 0x11a   :  { %v171_v4 = vmul.f32 %v277_v18, %v162_v38 }
 0x11c   :  { %v180_v5 = vadd.f32 %v278_v32, %v171_v4 }
 0x11e   :  { %258 = vmatmul.msk.f32.vlgmr.msra.gmra.mxu0 %vm28_vm0, %v180_v5  ;;  %260 = vmatmul.msk.f32.gmra.mxu1 %vm28_vm0, %v182_v6 }
 0x191   :  { %v241_v7 = vpop.f32.mrf.mxu3 }
 0x192   :  { %v242_v8 = vadd.f32 %v279_v39, %v241_v7  ;;  %v238_v9 = vpop.f32.mrf.mxu2 }
 0x193   :  { %v232_v10 = vpop.f32.mrf.mxu1  ;;  %v239_v11 = vadd.f32 %v279_v39, %v238_v9 }
 0x194   :  { %252 = vst.msk [vmem:[%s473_s5 + $0x20] sm:$0xff] %vm247_vm5, %v242_v8  ;;  %v233_v43 = vadd.f32 %v279_v39, %v232_v10 }
 0x195   :  { %251 = vst.msk [vmem:[%s473_s5 + $0x18] sm:$0xff] %vm247_vm5, %v239_v11 }
 0x196   :  { %249 = vst.msk [vmem:[%s473_s5 + $0x8] sm:$0xff] %vm247_vm5, %v233_v43 }
 0x19a   :  { %v244_v12 = vpop.f32.mrf.mxu3 }
 0x19b   :  { %v245_v13 = vadd.f32 %v279_v39, %v244_v12  ;;  %v229_v14 = vpop.f32.mrf.mxu0  ;;  %v235_v15 = vpop.f32.mrf.mxu1 }
 0x19c   :  { %v230_v16 = vadd.f32 %v279_v39, %v229_v14  ;;  %v236_v17 = vadd.f32 %v279_v39, %v235_v15 }
 0x19d   :  { %253 = vst.msk [vmem:[%s473_s5 + $0x28] sm:$0xff] %vm247_vm5, %v245_v13 }
 0x19e   :  { %248 = vst.msk [vmem:[%s473_s5] sm:$0xff] %vm247_vm5, %v230_v16 }
 0x19f   :  { %250 = vst.msk [vmem:[%s473_s5 + $0x10] sm:$0xff] %vm247_vm5, %v236_v17 }

// kernel: vit_wrapper_forward.15
= control target key start
LH: loop header
LB: loop body
LE: loop exit
PB: predicated region body
PF: predicated region fallthrough
CT: control target
= control target key end

     0   :  { %vm22_vm0 = vcmask 261120   ;;  %v207_v12 = vmov 32.0   ;;  %s358_s0 = inlined_call_operand.vmem [shape: f32[48,32], index: 0, kind: input, shape index: {}]   ;;  %s359_s1 = inlined_call_operand.vmem [shape: f32[1,32], index: 1, kind: input, shape index: {}]   ;;  %s360_s2 = inlined_call_operand.vmem [shape: f32[1,32], index: 2, kind: input, shape index: {}]   ;;  %s361_s3 = inlined_call_operand.vmem [shape: f32[48,32], index: 3, kind: output, shape index: {}]  }
   0x1   :  { %v18_v0 = vld [vmem:[%s358_s0 + $0x20] sm:$0xff]  ;;  %v16_v1 = vld [vmem:[%s358_s0 + $0x10] sm:$0xff]  ;;  %v19_v6 = vld [vmem:[%s358_s0 + $0x28] sm:$0xff]  ;;  %193 = vrcp.f32 %v207_v12 }
   0x2   :  { %v14_v2 = vld [vmem:[%s358_s0] sm:$0xff]  ;;  %v35_v3 = vsel %vm22_vm0, %v18_v0, 0.0  ;;  %v29_v4 = vsel %vm22_vm0, %v16_v1, 0.0  ;;  %v17_v7 = vld [vmem:[%s358_s0 + $0x18] sm:$0xff]  ;;  %v15_v8 = vld [vmem:[%s358_s0 + $0x8] sm:$0xff]  ;;  %v38_v9 = vsel %vm22_vm0, %v19_v6, 0.0 }
   0x3   :  { %v23_v5 = vsel %vm22_vm0, %v14_v2, 0.0  ;;  %36 = vadd.xlane.f32.xlu2 %v35_v3  ;;  %30 = vadd.xlane.f32.xlu1 %v29_v4  ;;  %v32_v10 = vsel %vm22_vm0, %v17_v7, 0.0  ;;  %v26_v11 = vsel %vm22_vm0, %v15_v8, 0.0 }
   0x4   :  { %24 = vadd.xlane.f32.xlu0 %v23_v5 }
   0x7   :  { %v194_v13 = vpop.eup %193 }
   0x8   :  { %v42_v14 = vmul.f32 32.0, %v194_v13  ;;  %vm46_vm1 = vweird.f32 %v194_v13 }
   0xa   :  { %v43_v15 = vsub.f32 1.0, %v42_v14 }
   0xb   :  { %39 = vadd.xlane.f32.xlu2 %v38_v9  ;;  %33 = vadd.xlane.f32.xlu1 %v32_v10 }
   0xc   :  { %27 = vadd.xlane.f32.xlu0 %v26_v11  ;;  %v44_v16 = vmul.f32 %v194_v13, %v43_v15 }
   0xe   :  { %v45_v17 = vadd.f32 %v194_v13, %v44_v16 }
  0x10   :  { %v252_v18 = vsel %vm46_vm1, %v194_v13, %v45_v17 }
  0x76   :  { %v37_v19 = vpop.xlane.xlu2 %36  ;;  %v31_v20 = vpop.xlane.xlu1 %30 }
  0x77   :  { %v50_v21 = vmul.f32 %v252_v18, %v31_v20  ;;  %v25_v22 = vpop.xlane.xlu0 %24  ;;  %v52_v38 = vmul.f32 %v252_v18, %v37_v19  ;;  %v307_v19 = vld [vmem:[%s359_s1] ss:$0 sm:$0xff] }
  0x78   :  { %v48_v23 = vmul.f32 %v252_v18, %v25_v22 }
  0x79   :  { %v256_v24 = vsub.f32 %v16_v1, %v50_v21  ;;  %v284_v45 = vsub.f32 %v18_v0, %v52_v38 }
  0x7a   :  { %v258_v25 = vsub.f32 %v14_v2, %v48_v23 }
  0x7b   :  { %v62_v26 = vmul.f32 %v256_v24, %v256_v24  ;;  %v64_v47 = vmul.f32 %v284_v45, %v284_v45 }
  0x7c   :  { %v60_v27 = vmul.f32 %v258_v25, %v258_v25 }
  0x7d   :  { %v72_v28 = vsel %vm22_vm0, %v62_v26, 0.0  ;;  %v78_v48 = vsel %vm22_vm0, %v64_v47, 0.0  ;;  %v192_v26 = vld [vmem:[%s360_s2] ss:$0 sm:$0xff] }
  0x7e   :  { %v40_v29 = vpop.xlane.xlu2 %39  ;;  %73 = vadd.xlane.f32.xlu2 %v72_v28  ;;  %v34_v30 = vpop.xlane.xlu1 %33  ;;  %v66_v31 = vsel %vm22_vm0, %v60_v27, 0.0 }
  0x7f   :  { %v53_v32 = vmul.f32 %v252_v18, %v40_v29  ;;  %v51_v33 = vmul.f32 %v252_v18, %v34_v30  ;;  %67 = vadd.xlane.f32.xlu0 %v66_v31  ;;  %v28_v34 = vpop.xlane.xlu0 %27 }
  0x80   :  { %v49_v35 = vmul.f32 %v252_v18, %v28_v34 }
  0x81   :  { %v269_v36 = vsub.f32 %v19_v6, %v53_v32  ;;  %v271_v37 = vsub.f32 %v17_v7, %v51_v33 }
  0x82   :  { %v274_v39 = vsub.f32 %v15_v8, %v49_v35 }
  0x83   :  { %v65_v40 = vmul.f32 %v269_v36, %v269_v36  ;;  %v63_v41 = vmul.f32 %v271_v37, %v271_v37 }
  0x84   :  { %v61_v42 = vmul.f32 %v274_v39, %v274_v39 }
  0x85   :  { %v81_v43 = vsel %vm22_vm0, %v65_v40, 0.0  ;;  %v75_v44 = vsel %vm22_vm0, %v63_v41, 0.0 }
  0x86   :  { %82 = vadd.xlane.f32.xlu2 %v81_v43  ;;  %v69_v46 = vsel %vm22_vm0, %v61_v42, 0.0 }
  0x87   :  { %76 = vadd.xlane.f32.xlu0 %v75_v44  ;;  %70 = vadd.xlane.f32.xlu1 %v69_v46 }
  0x8f   :  { %79 = vadd.xlane.f32.xlu1 %v78_v48 }
  0xf1   :  { %v74_v49 = vpop.xlane.xlu2 %73 }
  0xf2   :  { %v86_v50 = vmul.f32 %v74_v49, %v252_v18  ;;  %v68_v51 = vpop.xlane.xlu0 %67 }
  0xf3   :  { %v84_v52 = vmul.f32 %v68_v51, %v252_v18 }
  0xf4   :  { %v92_v53 = vadd.f32 1e-06, %v86_v50 }
  0xf5   :  { %v90_v54 = vadd.f32 1e-06, %v84_v52 }
  0xf6   :  { %195 = vrsqrt.f32 %v92_v53  ;;  %vm122_vm2 = vweird.f32 %v92_v53 }
  0xf7   :  { %197 = vrsqrt.f32 %v90_v54  ;;  %vm102_vm6 = vweird.f32 %v90_v54 }
  0xf9   :  { %v83_v55 = vpop.xlane.xlu2 %82 }
  0xfa   :  { %v89_v56 = vmul.f32 %v83_v55, %v252_v18  ;;  %v71_v57 = vpop.xlane.xlu1 %70  ;;  %v77_v58 = vpop.xlane.xlu0 %76 }
  0xfb   :  { %v85_v59 = vmul.f32 %v71_v57, %v252_v18  ;;  %v87_v60 = vmul.f32 %v77_v58, %v252_v18 }
  0xfc   :  { %v196_v61 = vpop.eup %195  ;;  %v95_v62 = vadd.f32 1e-06, %v89_v56 }
  0xfd   :  { %v198_v63 = vpop.eup %197  ;;  %v117_v0 = vmul.f32 %v196_v61, %v92_v53  ;;  %v295_v1 = vadd.f32 1e-06, %v85_v59  ;;  %v297_v2 = vadd.f32 1e-06, %v87_v60  ;;  %vm123_vm3 = vweird.f32 %v196_v61 }
  0xfe   :  { %v97_v3 = vmul.f32 %v198_v63, %v90_v54  ;;  %199 = vrsqrt.f32 %v95_v62  ;;  %vm103_vm4 = vweird.f32 %v198_v63  ;;  %vm124_vm5 = vmor %vm122_vm2, %vm123_vm3  ;;  %vm152_vm8 = vweird.f32 %v95_v62 }
  0xff   :  { %v118_v4 = vmul.f32 %v196_v61, %v117_v0  ;;  %201 = vrsqrt.f32 %v295_v1  ;;  %vm104_vm7 = vmor %vm102_vm6, %vm103_vm4  ;;  %vm132_vm11 = vweird.f32 %v297_v2  ;;  %vm112_vm14 = vweird.f32 %v295_v1 }
 0x100   :  { %v98_v5 = vmul.f32 %v198_v63, %v97_v3  ;;  %203 = vrsqrt.f32 %v297_v2 }
 0x101   :  { %v119_v6 = vmul.f32 0.5, %v118_v4 }
 0x102   :  { %v99_v7 = vmul.f32 0.5, %v98_v5  ;;  %v80_v8 = vpop.xlane.xlu1 %79 }
 0x103   :  { %v120_v9 = vsub.f32 1.5, %v119_v6  ;;  %v88_v10 = vmul.f32 %v80_v8, %v252_v18 }
 0x104   :  { %v200_v11 = vpop.eup %199  ;;  %v100_v12 = vsub.f32 1.5, %v99_v7 }
 0x105   :  { %v202_v13 = vpop.eup %201  ;;  %v121_v14 = vmul.f32 %v196_v61, %v120_v9  ;;  %v147_v15 = vmul.f32 %v200_v11, %v95_v62  ;;  %v302_v16 = vadd.f32 1e-06, %v88_v10  ;;  %vm153_vm9 = vweird.f32 %v200_v11 }
 0x106   :  { %v204_v17 = vpop.eup %203  ;;  %v101_v20 = vmul.f32 %v198_v63, %v100_v12  ;;  %v107_v21 = vmul.f32 %v202_v13, %v295_v1  ;;  %vm113_vm10 = vweird.f32 %v202_v13  ;;  %vm154_vm13 = vmor %vm152_vm8, %vm153_vm9 }
 0x107   :  { %v125_v18 = vsel %vm124_vm5, %v196_v61, %v121_v14  ;;  %v148_v22 = vmul.f32 %v200_v11, %v147_v15  ;;  %v127_v23 = vmul.f32 %v204_v17, %v297_v2  ;;  %205 = vrsqrt.f32 %v302_v16  ;;  %vm114_vm15 = vmor %vm112_vm14, %vm113_vm10 }
 0x108   :  { %v158_v27 = vmul.f32 %v125_v18, %v256_v24  ;;  %v105_v28 = vsel %vm104_vm7, %v198_v63, %v101_v20  ;;  %v108_v29 = vmul.f32 %v202_v13, %v107_v21  ;;  %vm133_vm12 = vweird.f32 %v204_v17 }
 0x109   :  { %v156_v30 = vmul.f32 %v105_v28, %v258_v25  ;;  %v149_v31 = vmul.f32 0.5, %v148_v22  ;;  %v128_v32 = vmul.f32 %v204_v17, %v127_v23  ;;  %vm134_vm1 = vmor %vm132_vm11, %vm133_vm12  ;;  %vm142_vm3 = vweird.f32 %v302_v16 }
 0x10a   :  { %v167_v33 = vmul.f32 %v307_v19, %v158_v27  ;;  %v109_v34 = vmul.f32 0.5, %v108_v29 }
 0x10b   :  { %v165_v35 = vmul.f32 %v307_v19, %v156_v30  ;;  %v150_v38 = vsub.f32 1.5, %v149_v31  ;;  %v129_v40 = vmul.f32 0.5, %v128_v32 }
 0x10c   :  { %v176_v41 = vadd.f32 %v192_v26, %v167_v33  ;;  %v110_v42 = vsub.f32 1.5, %v109_v34 }
 0x10d   :  { %v174_v24 = vadd.f32 %v192_v26, %v165_v35  ;;  %v151_v43 = vmul.f32 %v200_v11, %v150_v38  ;;  %v130_v44 = vsub.f32 1.5, %v129_v40  ;;  %v206_v25 = vpop.eup %205 }
 0x10e   :  { %182 = vst.msk [vmem:[%s361_s3 + $0x10] sm:$0xff] %vm22_vm0, %v176_v41  ;;  %v111_v46 = vmul.f32 %v202_v13, %v110_v42  ;;  %v137_v49 = vmul.f32 %v206_v25, %v302_v16  ;;  %vm143_vm2 = vweird.f32 %v206_v25 }
 0x10f   :  { %180 = vst.msk [vmem:[%s361_s3] sm:$0xff] %vm22_vm0, %v174_v24  ;;  %v155_v47 = vsel %vm154_vm13, %v200_v11, %v151_v43  ;;  %v131_v48 = vmul.f32 %v204_v17, %v130_v44  ;;  %vm144_vm4 = vmor %vm142_vm3, %vm143_vm2 }
 0x110   :  { %v161_v50 = vmul.f32 %v155_v47, %v269_v36  ;;  %v115_v51 = vsel %vm114_vm15, %v202_v13, %v111_v46  ;;  %v138_v54 = vmul.f32 %v206_v25, %v137_v49 }
 0x111   :  { %v157_v52 = vmul.f32 %v115_v51, %v274_v39  ;;  %v135_v53 = vsel %vm134_vm1, %v204_v17, %v131_v48 }
 0x112   :  { %v170_v55 = vmul.f32 %v307_v19, %v161_v50  ;;  %v159_v56 = vmul.f32 %v135_v53, %v271_v37  ;;  %v139_v58 = vmul.f32 0.5, %v138_v54 }
 0x113   :  { %v166_v57 = vmul.f32 %v307_v19, %v157_v52 }
 0x114   :  { %v179_v59 = vadd.f32 %v192_v26, %v170_v55  ;;  %v168_v60 = vmul.f32 %v307_v19, %v159_v56  ;;  %v140_v36 = vsub.f32 1.5, %v139_v58 }
 0x115   :  { %v175_v61 = vadd.f32 %v192_v26, %v166_v57 }
 0x116   :  { %185 = vst.msk [vmem:[%s361_s3 + $0x28] sm:$0xff] %vm22_vm0, %v179_v59  ;;  %v177_v39 = vadd.f32 %v192_v26, %v168_v60  ;;  %v141_v37 = vmul.f32 %v206_v25, %v140_v36 }
 0x117   :  { %181 = vst.msk [vmem:[%s361_s3 + $0x8] sm:$0xff] %vm22_vm0, %v175_v61 }
 0x118   :  { %183 = vst.msk [vmem:[%s361_s3 + $0x18] sm:$0xff] %vm22_vm0, %v177_v39  ;;  %v145_v62 = vsel %vm144_vm4, %v206_v25, %v141_v37 }
 0x119   :  { %v160_v63 = vmul.f32 %v145_v62, %v284_v45 }
 0x11b   :  { %v169_v0 = vmul.f32 %v307_v19, %v160_v63 }
 0x11d   :  { %v178_v1 = vadd.f32 %v192_v26, %v169_v0 }
 0x11f   :  { %184 = vst.msk [vmem:[%s361_s3 + $0x20] sm:$0xff] %vm22_vm0, %v178_v1 }

// kernel: vit_wrapper_forward.10
= control target key start
LH: loop header
LB: loop body
LE: loop exit
PB: predicated region body
PF: predicated region fallthrough
CT: control target
= control target key end

     0   :  { %s1102_s15 = smov 0   ;;  %s1363_s0 = inlined_call_operand.vmem [shape: f32[2,24,96], index: 0, kind: input, shape index: {}]   ;;  %s1364_s1 = inlined_call_operand.vmem [shape: f32[2,24,32], index: 1, kind: input, shape index: {}]   ;;  %s1365_s2 = inlined_call_operand.vmem [shape: f32[32,32], index: 2, kind: input, shape index: {}]   ;;  %s1366_s3 = inlined_call_operand.vmem [shape: f32[1,32], index: 3, kind: input, shape index: {}]   ;;  %s1367_s4 = inlined_call_operand.vmem [shape: f32[2,24,32], index: 4, kind: output, shape index: {}]  }
   0x1 LB: > { %s911_s16 = sadd.s32 4294967295, %s1061_s15   ;;  %p915_p0 = scmp.ge.s32.totalorder %s1061_s15, 1  ;;  %s1061_s15 = sphi %s1102_s15, %s14_s15  }
   0x2   : > { %p172_p1 = scmp.lt.s32.totalorder %s1061_s15, 3 }
   0x4   : > { %p173_p2 = pnand %p915_p0, %p172_p1 }
   0x5   : > { %p203_p3 = scmp.lt.s32.totalorder (!%p173_p2), %s911_s16, 1  ;;  %s1063_s21 = smov (!%p173_p2), 96  }
   0x6   : > { %176 = sbr.rel (%p173_p2) target bundleno = 1396 (0x574), region = 36  ;;  %s1064_s22 = smov (!%p173_p2), 88  }
   0x7   : > { %s1065_s23 = smov (!%p173_p2), 120   ;;  %s1066_s24 = smov (!%p173_p2), 64  }
   0x8   : > { %s1067_s25 = smov (!%p173_p2), 80   ;;  %s1068_s26 = smov (!%p173_p2), 72  }
   0x9   : > { %s1069_s27 = smov (!%p173_p2), 104   ;;  %s1070_s28 = smov (!%p173_p2), 112  }
   0xa   : > { %s1071_s29 = smov (!%p173_p2), 56   ;;  %s1072_s30 = smov (!%p173_p2), 48  }
   0xb   : > { %s1369_s16 = smov (!%p203_p3, %s911_s16), 1  ;;  %vm233_vm0 = vcmask 64512   ;;  %v221_v13 = vlaneseq  ;;  %vm277_vm2 = vcmask 195584   ;;  %s1073_s5 = smov 40   ;;  %vm784_vm3 = vcmask 130048  }
   0xc   : > { %s1110_s17 = smul.u32 24, %s1369_s16  ;;  %s1074_s6 = smov 8   ;;  %vm799_vm4 = vcmask 261120  }
   0xd   : > { %v1160_v14 = vand.u32 127, %v221_v13  ;;  %s1075_s7 = smov 24   ;;  %s1076_s8 = smov 16  }
   0xe   : > { %s207_s20 = scalar_lea.vmem %s1363_s0, %s1110_s17 }
   0xf   : > { %v1116_v0 = vld [vmem:[%s207_s20 + $0x10] sm:$0xff]  ;;  %v1118_v1 = vld [vmem:[%s207_s20] sm:$0xff]  ;;  %v1123_v2 = vld [vmem:[%s207_s20 + $0x8] sm:$0xff]  ;;  %vm223_vm1 = vcmp.lt.s32.totalorder %v1160_v14, 17 }
  0x10   : > { %231 = vrot.lane.b32.xlu0 %v1116_v0, %s1063_s21  ;;  %227 = vrot.lane.b32.xlu1 %v1118_v1, %s1063_s21  ;;  %v1133_v3 = vpack.i.bf16 %v1123_v2, %v1116_v0 }
  0x11   : > { %365 = vrot.lane.b32.xlu2 %v1116_v0, %s1064_s22 }
  0x18   : > { %229 = vrot.lane.b32.xlu0 %v1123_v2, %s1063_s21  ;;  %359 = vrot.lane.b32.xlu1 %v1116_v0, %s1065_s23  ;;  %s212_s21 = scalar_lea.vmem %s1364_s1, %s1110_s17 }
  0x20   : > { %363 = vrot.lane.b32.xlu0 %v1123_v2, %s1064_s22 }
  0x28   : > { %361 = vrot.lane.b32.xlu0 %v1118_v1, %s1064_s22 }
  0x30   : > { %355 = vrot.lane.b32.xlu0 %v1118_v1, %s1065_s23 }
  0x38   : > { %357 = vrot.lane.b32.xlu0 %v1123_v2, %s1065_s23 }
  0x40   : > { %987 = vrot.lane.b32.xlu0 %v1133_v3, %s1066_s24 }
  0x48   : > { %311 = vrot.lane.b32.xlu0 %v1118_v1, %s1066_s24 }
  0x50   : > { %495 = vrot.lane.b32.xlu0 %v1116_v0, %s1067_s25 }
  0x58   : > { %625 = vrot.lane.b32.xlu0 %v1116_v0, %s1068_s26 }
  0x60   : > { %623 = vrot.lane.b32.xlu0 %v1123_v2, %s1068_s26 }
  0x68   : > { %621 = vrot.lane.b32.xlu0 %v1118_v1, %s1068_s26  ;;  %s217_s26 = scalar_lea.vmem %s1367_s4, %s1110_s17 }
  0x6b   : > { %v366_v4 = vpop.permute.xlu2 %365 }
  0x6c   : > { %928 = vmatpush.xpose.msk.msra.mxu2 %vm233_vm0, %v366_v4 }
  0x70   : > { %615 = vrot.lane.b32.xlu0 %v1118_v1, %s1069_s27 }
  0x78   : > { %489 = vrot.lane.b32.xlu0 %v1116_v0, %s1070_s28 }
  0x82   : > { %v232_v5 = vpop.permute.xlu0 %231  ;;  %v228_v7 = vpop.permute.xlu1 %227 }
  0x83   : > { %919 = vmatpush.xpose.msk.msra.mxu0 %vm233_vm0, %v232_v5 }
  0x8a   : > { %v230_v6 = vpop.permute.xlu0 %229  ;;  %v360_v16 = vpop.permute.xlu1 %359 }
  0x8b   : > { %920 = vmatpush.xpose.msk.msra.mxu0 %vm233_vm0, %v230_v6 }
  0x8f   : > { %921 = vmatpush.xpose.msk.msra.mxu0 %vm233_vm0, %v228_v7 }
  0x92   : > { %922 = vmatmul.msk.f32.vlgmr.msra.gmra.mxu0 %vm233_vm0, %v1118_v1  ;;  %v364_v8 = vpop.permute.xlu0 %363 }
  0x93   : > { %929 = vmatpush.xpose.msk.msra.mxu2 %vm233_vm0, %v364_v8 }
  0x9a   : > { %923 = vmatmul.msk.f32.gmra.mxu0 %vm233_vm0, %v1123_v2  ;;  %v362_v9 = vpop.permute.xlu0 %361 }
  0x9b   : > { %930 = vmatpush.xpose.msk.msra.mxu2 %vm233_vm0, %v362_v9 }
  0xa2   : > { %v356_v10 = vpop.permute.xlu0 %355  ;;  %924 = vmatmul.msk.f32.gmra.mxu0 %vm233_vm0, %v1116_v0 }
  0xa3   : > { %931 = vmatmul.msk.f32.vlgmr.msra.gmra.mxu2 %vm233_vm0, %v356_v10 }
  0xaa   : > { %v358_v11 = vpop.permute.xlu0 %357 }
  0xab   : > { %932 = vmatmul.msk.f32.gmra.mxu2 %vm233_vm0, %v358_v11 }
  0xb2   : > { %v988_v12 = vpop.permute.xlu0 %987 }
  0xb3   : > { %933 = vmatmul.msk.f32.gmra.mxu2 %vm233_vm0, %v360_v16  ;;  %v989_v39 = vunpack.i.l.bf16 %v988_v12  ;;  %v990_v40 = vunpack.i.h.bf16 %v988_v12 }
  0xb5   : > { %342 = vmatpush.msra.mxu1 %v989_v39  ;;  %960 = vmatpush.msra.mxu3 %v989_v39 }
  0xb7   : > { %343 = vmatpush.msra.mxu1 %v990_v40  ;;  %961 = vmatpush.msra.mxu3 %v990_v40 }
  0xba   : > { %v312_v15 = vpop.permute.xlu0 %311 }
  0xbb   : > { %344 = vmatpush.msra.mxu1 %v312_v15  ;;  %962 = vmatpush.msra.mxu3 %v312_v15 }
  0xc2   : > { %v496_v20 = vpop.permute.xlu0 %495 }
  0xc3   : > { %937 = vmatpush.xpose.msk.msrb.mxu1 %vm233_vm0, %v496_v20 }
  0xca   : > { %v626_v24 = vpop.permute.xlu0 %625 }
  0xcb   : > { %946 = vmatpush.xpose.msk.msrb.mxu0 %vm233_vm0, %v626_v24 }
  0xd2   : > { %v624_v25 = vpop.permute.xlu0 %623 }
  0xd3   : > { %947 = vmatpush.xpose.msk.msrb.mxu0 %vm233_vm0, %v624_v25 }
  0xda   : > { %v622_v29 = vpop.permute.xlu0 %621 }
  0xdb   : > { %948 = vmatpush.xpose.msk.msrb.mxu0 %vm233_vm0, %v622_v29 }
  0xe2   : > { %v616_v30 = vpop.permute.xlu0 %615 }
  0xe3   : > { %949 = vmatmul.msk.f32.vlgmr.msrb.gmra.mxu0 %vm233_vm0, %v616_v30 }
  0xea   : > { %v490_v45 = vpop.permute.xlu0 %489 }
 0x10f   : > { %v263_v17 = vpop.f32.mrf.mxu0 }
 0x110   : > { %v274_v18 = vsel %vm223_vm1, %v263_v17, -1e+30 }
 0x111   : > { %v278_v19 = vsel %vm277_vm2, %v274_v18, -inf }
 0x112   : > { %279 = vmax.xlane.f32.xlu1 %v278_v19 }
 0x117   : > { %v266_v21 = vpop.f32.mrf.mxu0 }
 0x118   : > { %v275_v22 = vsel %vm223_vm1, %v266_v21, -1e+30 }
 0x119   : > { %v281_v23 = vsel %vm277_vm2, %v275_v22, -inf }
 0x11a   : > { %282 = vmax.xlane.f32.xlu2 %v281_v23 }
 0x11f   : > { %v269_v46 = vpop.f32.mrf.mxu0 }
 0x120   : > { %v276_v50 = vsel %vm223_vm1, %v269_v46, -1e+30 }
 0x121   : > { %v284_v53 = vsel %vm277_vm2, %v276_v50, -inf }
 0x126   : > { %v396_v26 = vpop.f32.mrf.mxu2 }
 0x127   : > { %v405_v27 = vsel %vm223_vm1, %v396_v26, -1e+30 }
 0x128   : > { %v408_v28 = vsel %vm277_vm2, %v405_v27, -inf }
 0x129   : > { %409 = vmax.xlane.f32.xlu0 %v408_v28 }
 0x12b   : > { %491 = vrot.lane.b32.xlu1 %v1118_v1, %s1067_s25 }
 0x12e   : > { %v399_v47 = vpop.f32.mrf.mxu2 }
 0x12f   : > { %v1196_v49 = vsel %vm223_vm1, %v399_v47, -1e+30 }
 0x130   : > { %v411_v52 = vsel %vm277_vm2, %v1196_v49, -inf }
 0x132   : > { %493 = vrot.lane.b32.xlu2 %v1123_v2, %s1067_s25 }
 0x133   : > { %485 = vrot.lane.b32.xlu1 %v1118_v1, %s1070_s28 }
 0x136   : > { %v402_v56 = vpop.f32.mrf.mxu2 }
 0x137   : > { %v1209_v58 = vsel %vm223_vm1, %v402_v56, -1e+30 }
 0x138   : > { %v414_v60 = vsel %vm277_vm2, %v1209_v58, -inf }
 0x160   : > { %v656_v54 = vpop.f32.mrf.mxu0 }
 0x161   : > { %v1205_v57 = vsel %vm223_vm1, %v656_v54, -1e+30 }
 0x162   : > { %v668_v59 = vsel %vm277_vm2, %v1205_v57, -inf }
 0x185   : > { %v280_v31 = vpop.xlane.xlu1 %279 }
 0x186   : > { %v287_v32 = vsub.f32 %v274_v18, %v280_v31 }
 0x188   : > { %v290_v33 = vmul.f32 1.442695, %v287_v32 }
 0x18a   : > { %1007 = vpow2.f32 %v290_v33 }
 0x18d   : > { %v283_v34 = vpop.xlane.xlu2 %282 }
 0x18e   : > { %v288_v35 = vsub.f32 %v275_v22, %v283_v34 }
 0x190   : > { %v1008_v36 = vpop.eup %1007  ;;  %v292_v37 = vmul.f32 1.442695, %v288_v35 }
 0x191   : > { %v296_v38 = vsel %vm277_vm2, %v1008_v36, 0.0 }
 0x192   : > { %1009 = vpow2.f32 %v292_v37  ;;  %297 = vadd.xlane.f32.xlu2 %v296_v38 }
 0x195   : > { %v494_v43 = vpop.permute.xlu2 %493 }
 0x196   : > { %938 = vmatpush.xpose.msk.msrb.mxu1 %vm233_vm0, %v494_v43 }
 0x198   : > { %v1010_v41 = vpop.eup %1009 }
 0x199   : > { %v299_v42 = vsel %vm277_vm2, %v1010_v41, 0.0 }
 0x19a   : > { %300 = vadd.xlane.f32.xlu1 %v299_v42 }
 0x19c   : > { %v410_v48 = vpop.xlane.xlu0 %409 }
 0x19d   : > { %v492_v44 = vpop.permute.xlu1 %491  ;;  %v417_v51 = vsub.f32 %v405_v27, %v410_v48 }
 0x19e   : > { %939 = vmatpush.xpose.msk.msrb.mxu1 %vm233_vm0, %v492_v44 }
 0x19f   : > { %v420_v55 = vmul.f32 1.442695, %v417_v51 }
 0x1a1   : > { %1011 = vpow2.f32 %v420_v55 }
 0x1a5   : > { %v486_v63 = vpop.permute.xlu1 %485 }
 0x1a7   : > { %v1215_v61 = vpop.eup %1011 }
 0x1a8   : > { %v426_v62 = vsel %vm277_vm2, %v1215_v61, 0.0 }
 0x1aa   : > { %487 = vrot.lane.b32.xlu2 %v1123_v2, %s1070_s28 }
 0x1b2   : > { %619 = vrot.lane.b32.xlu2 %v1116_v0, %s1069_s27 }
 0x1b3   : > { %617 = vrot.lane.b32.xlu1 %v1123_v2, %s1069_s27 }
 0x1db   : > { %412 = vmax.xlane.f32.xlu2 %v411_v52 }
 0x1dd   : > { %285 = vmax.xlane.f32.xlu1 %v284_v53 }
 0x1e3   : > { %669 = vmax.xlane.f32.xlu2 %v668_v59 }
 0x1e5   : > { %415 = vmax.xlane.f32.xlu1 %v414_v60 }
 0x1eb   : > { %427 = vadd.xlane.f32.xlu2 %v426_v62 }
 0x203   : > { %441 = vrot.lane.b32.xlu2 %v1118_v1, %s1071_s29 }
 0x205   : > { %v298_v0 = vpop.xlane.xlu2 %297 }
 0x206   : > { %1013 = vrcp.f32 %v298_v0 }
 0x20c   : > { %v1014_v2 = vpop.eup %1013 }
 0x20d   : > { %v301_v4 = vpop.xlane.xlu1 %300  ;;  %v308_v5 = vmul.f32 %v1014_v2, %v1008_v36  ;;  %v488_v8 = vpop.permute.xlu2 %487 }
 0x20e   : > { %1015 = vrcp.f32 %v301_v4 }
 0x20f   : > { %925 = vmatmul.msk.f32.vlgmr.msra.gmra.mxu1 %vm277_vm2, %v308_v5 }
 0x214   : > { %v1016_v6 = vpop.eup %1015 }
 0x215   : > { %v309_v7 = vmul.f32 %v1016_v6, %v1010_v41  ;;  %v620_v10 = vpop.permute.xlu2 %619 }
 0x217   : > { %926 = vmatmul.msk.f32.gmra.mxu1 %vm277_vm2, %v309_v7 }
 0x21f   : > { %940 = vmatmul.msk.f32.vlgmr.msrb.gmra.mxu1 %vm233_vm0, %v486_v63 }
 0x225   : > { %v618_v9 = vpop.permute.xlu1 %617 }
 0x226   : > { %950 = vmatmul.msk.f32.gmra.mxu0 %vm233_vm0, %v618_v9 }
 0x227   : > { %941 = vmatmul.msk.f32.gmra.mxu1 %vm233_vm0, %v488_v8 }
 0x22e   : > { %951 = vmatmul.msk.f32.gmra.mxu0 %vm233_vm0, %v620_v10 }
 0x22f   : > { %942 = vmatmul.msk.f32.gmra.mxu1 %vm233_vm0, %v490_v45 }
 0x24e   : > { %v413_v23 = vpop.xlane.xlu2 %412 }
 0x24f   : > { %v418_v25 = vsub.f32 %v1196_v49, %v413_v23 }
 0x250   : > { %v286_v13 = vpop.xlane.xlu1 %285 }
 0x251   : > { %v289_v15 = vsub.f32 %v276_v50, %v286_v13  ;;  %v422_v32 = vmul.f32 1.442695, %v418_v25 }
 0x253   : > { %v294_v17 = vmul.f32 1.442695, %v289_v15 }
 0x255   : > { %1017 = vpow2.f32 %v294_v17 }
 0x256   : > { %1019 = vpow2.f32 %v422_v32  ;;  %v670_v43 = vpop.xlane.xlu2 %669 }
 0x257   : > { %v677_v44 = vsub.f32 %v1205_v57, %v670_v43 }
 0x258   : > { %v416_v34 = vpop.xlane.xlu1 %415 }
 0x259   : > { %v419_v37 = vsub.f32 %v1209_v58, %v416_v34  ;;  %v680_v45 = vmul.f32 1.442695, %v677_v44 }
 0x25b   : > { %v1018_v22 = vpop.eup %1017  ;;  %v424_v39 = vmul.f32 1.442695, %v419_v37 }
 0x25c   : > { %v302_v30 = vsel %vm277_vm2, %v1018_v22, 0.0  ;;  %v1256_v40 = vpop.eup %1019 }
 0x25d   : > { %1021 = vpow2.f32 %v424_v39  ;;  %v429_v41 = vsel %vm277_vm2, %v1256_v40, 0.0 }
 0x25e   : > { %1023 = vpow2.f32 %v680_v45  ;;  %v428_v48 = vpop.xlane.xlu2 %427 }
 0x263   : > { %v1260_v42 = vpop.eup %1021 }
 0x264   : > { %v432_v14 = vsel %vm277_vm2, %v1260_v42, 0.0  ;;  %v1270_v46 = vpop.eup %1023 }
 0x265   : > { %v686_v47 = vsel %vm277_vm2, %v1270_v46, 0.0 }
 0x266   : > { %v442_v50 = vpop.permute.xlu2 %441 }
 0x28c   : > { %v1228_v11 = vpop.f32.mrf.mxu1 }
 0x294   : > { %v1230_v12 = vpop.f32.mrf.mxu1 }
 0x29c   : > { %v526_v16 = vpop.f32.mrf.mxu1 }
 0x29d   : > { %v535_v35 = vsel %vm223_vm1, %v526_v16, -1e+30 }
 0x29e   : > { %v538_v38 = vsel %vm277_vm2, %v535_v35, -inf }
 0x2a3   : > { %v659_v18 = vpop.f32.mrf.mxu0 }
 0x2a4   : > { %v1234_v19 = vsel %vm223_vm1, %v659_v18, -1e+30  ;;  %v529_v20 = vpop.f32.mrf.mxu1 }
 0x2a5   : > { %v671_v21 = vsel %vm277_vm2, %v1234_v19, -inf  ;;  %v536_v33 = vsel %vm223_vm1, %v529_v20, -1e+30 }
 0x2a6   : > { %672 = vmax.xlane.f32.xlu0 %v671_v21  ;;  %v541_v36 = vsel %vm277_vm2, %v536_v33, -inf }
 0x2ab   : > { %v662_v24 = vpop.f32.mrf.mxu0 }
 0x2ac   : > { %v1241_v26 = vsel %vm223_vm1, %v662_v24, -1e+30  ;;  %v532_v27 = vpop.f32.mrf.mxu1 }
 0x2ad   : > { %v537_v28 = vsel %vm223_vm1, %v532_v27, -1e+30  ;;  %v674_v29 = vsel %vm277_vm2, %v1241_v26, -inf }
 0x2ae   : > { %675 = vmax.xlane.f32.xlu1 %v674_v29  ;;  %303 = vadd.xlane.f32.xlu0 %v302_v30  ;;  %v544_v31 = vsel %vm277_vm2, %v537_v28, -inf }
 0x2af   : > { %545 = vmax.xlane.f32.xlu2 %v544_v31 }
 0x2b6   : > { %542 = vmax.xlane.f32.xlu1 %v541_v36  ;;  %539 = vmax.xlane.f32.xlu0 %v538_v38 }
 0x2be   : > { %430 = vadd.xlane.f32.xlu0 %v429_v41 }
 0x2c6   : > { %433 = vadd.xlane.f32.xlu0 %v432_v14 }
 0x2c7   : > { %1002 = vrot.lane.b32.xlu2 %v1133_v3, %s1073_s5 }
 0x2cf   : > { %992 = vrot.lane.b32.xlu1 %v1133_v3, %s1071_s29 }
 0x2da   : > { %997 = vrot.lane.b32.xlu0 %v1133_v3, %s1072_s30 }
 0x2f9   : > { %687 = vadd.xlane.f32.xlu1 %v686_v47 }
 0x312   : > { %701 = vrot.lane.b32.xlu1 %v1118_v1, %s1073_s5 }
 0x319   : > { %v1275_v49 = vpop.xlane.xlu0 %672 }
 0x321   : > { %v304_v51 = vpop.xlane.xlu0 %303  ;;  %v676_v52 = vpop.xlane.xlu1 %675 }
 0x322   : > { %1025 = vrcp.f32 %v304_v51  ;;  %v546_v56 = vpop.xlane.xlu2 %545  ;;  %v679_v4 = vsub.f32 %v1241_v26, %v676_v52 }
 0x323   : > { %v549_v62 = vsub.f32 %v537_v28, %v546_v56 }
 0x324   : > { %v684_v7 = vmul.f32 1.442695, %v679_v4  ;;  %v791_v4 = vld [vmem:[%s1365_s2] sm:$0xff] }
 0x325   : > { %v554_v63 = vmul.f32 1.442695, %v549_v62  ;;  %v793_v62 = vld [vmem:[%s1365_s2 + $0x10] sm:$0xff] }
 0x328   : > { %v1026_v3 = vpop.eup %1025 }
 0x329   : > { %v540_v53 = vpop.xlane.xlu0 %539  ;;  %v543_v54 = vpop.xlane.xlu1 %542  ;;  %v310_v55 = vmul.f32 %v1026_v3, %v1018_v22 }
 0x32a   : > { %v547_v57 = vsub.f32 %v535_v35, %v540_v53  ;;  %v548_v58 = vsub.f32 %v536_v33, %v543_v54  ;;  %v1003_v27 = vpop.permute.xlu2 %1002 }
 0x32b   : > { %927 = vmatmul.msk.f32.vlgmr.msra.gmra.mxu3 %vm277_vm2, %v310_v55  ;;  %v1004_v29 = vunpack.i.l.bf16 %v1003_v27  ;;  %v1005_v30 = vunpack.i.h.bf16 %v1003_v27  ;;  %v835_v27 = vld [vmem:[%s212_s21] sm:$0xff] }
 0x32c   : > { %v550_v59 = vmul.f32 1.442695, %v547_v57  ;;  %v552_v60 = vmul.f32 1.442695, %v548_v58 }
 0x32d   : > { %732 = vmatpush.msrb.mxu2 %v1004_v29 }
 0x32e   : > { %1027 = vpow2.f32 %v550_v59 }
 0x32f   : > { %1029 = vpow2.f32 %v552_v60  ;;  %733 = vmatpush.msrb.mxu2 %v1005_v30  ;;  %v794_v60 = vld [vmem:[%s1365_s2 + $0x18] sm:$0xff] }
 0x330   : > { %1031 = vpow2.f32 %v554_v63  ;;  %821 = vmatpush.msra.mxu1 %v794_v60  ;;  %v792_v63 = vld [vmem:[%s1365_s2 + $0x8] sm:$0xff] }
 0x331   : > { %1033 = vpow2.f32 %v684_v7  ;;  %v431_v10 = vpop.xlane.xlu0 %430 }
 0x332   : > { %1035 = vrcp.f32 %v428_v48  ;;  %822 = vmatpush.msra.mxu1 %v793_v62 }
 0x333   : > { %1037 = vrcp.f32 %v431_v10 }
 0x334   : > { %v1278_v0 = vpop.eup %1027  ;;  %823 = vmatpush.msra.mxu1 %v792_v63 }
 0x335   : > { %v1280_v2 = vpop.eup %1029  ;;  %v556_v5 = vsel %vm277_vm2, %v1278_v0, 0.0 }
 0x336   : > { %557 = vadd.xlane.f32.xlu0 %v556_v5  ;;  %v559_v6 = vsel %vm277_vm2, %v1280_v2, 0.0  ;;  %v1287_v8 = vpop.eup %1031  ;;  %824 = vmatpush.msra.mxu1 %v791_v4 }
 0x337   : > { %560 = vadd.xlane.f32.xlu2 %v559_v6  ;;  %v562_v9 = vsel %vm277_vm2, %v1287_v8, 0.0  ;;  %v1291_v17 = vpop.eup %1033 }
 0x338   : > { %v1036_v18 = vpop.eup %1035  ;;  %v692_v20 = vsel %vm277_vm2, %v1291_v17, 0.0 }
 0x339   : > { %v438_v21 = vmul.f32 %v1036_v18, %v1215_v61  ;;  %v434_v22 = vpop.xlane.xlu0 %433  ;;  %v1038_v23 = vpop.eup %1037 }
 0x33a   : > { %1039 = vrcp.f32 %v434_v22  ;;  %v439_v24 = vmul.f32 %v1038_v23, %v1256_v40 }
 0x33f   : > { %563 = vadd.xlane.f32.xlu2 %v562_v9 }
 0x340   : > { %v1040_v25 = vpop.eup %1039 }
 0x341   : > { %v993_v13 = vpop.permute.xlu1 %992  ;;  %v440_v31 = vmul.f32 %v1040_v25, %v1260_v42 }
 0x342   : > { %v994_v15 = vunpack.i.l.bf16 %v993_v13  ;;  %v995_v16 = vunpack.i.h.bf16 %v993_v13 }
 0x344   : > { %472 = vmatpush.msrb.mxu3 %v994_v15 }
 0x346   : > { %473 = vmatpush.msrb.mxu3 %v995_v16 }
 0x347   : > { %693 = vadd.xlane.f32.xlu2 %v692_v20 }
 0x348   : > { %474 = vmatpush.msrb.mxu3 %v442_v50 }
 0x349   : > { %934 = vmatmul.msk.f32.vlgmr.msrb.gmra.mxu3 %vm277_vm2, %v438_v21 }
 0x34a   : > { %571 = vrot.lane.b32.xlu0 %v1118_v1, %s1072_s30  ;;  %v678_v1 = vsub.f32 %v1234_v19, %v1275_v49 }
 0x34c   : > { %v998_v26 = vpop.permute.xlu0 %997  ;;  %v682_v32 = vmul.f32 1.442695, %v678_v1 }
 0x34d   : > { %v999_v28 = vunpack.i.l.bf16 %v998_v26  ;;  %v1000_v61 = vunpack.i.h.bf16 %v998_v26 }
 0x34e   : > { %1041 = vpow2.f32 %v682_v32 }
 0x34f   : > { %602 = vmatpush.msra.mxu3 %v999_v28 }
 0x351   : > { %935 = vmatmul.msk.f32.gmra.mxu3 %vm277_vm2, %v439_v24 }
 0x352   : > { %603 = vmatpush.msra.mxu3 %v1000_v61  ;;  %v836_v61 = vld [vmem:[%s212_s21 + $0x8] sm:$0xff] }
 0x354   : > { %v1042_v33 = vpop.eup %1041 }
 0x355   : > { %v689_v34 = vsel %vm277_vm2, %v1042_v33, 0.0 }
 0x359   : > { %936 = vmatmul.msk.f32.gmra.mxu3 %vm277_vm2, %v440_v31 }
 0x36c   : > { %v688_v35 = vpop.xlane.xlu1 %687 }
 0x36d   : > { %1043 = vrcp.f32 %v688_v35 }
 0x373   : > { %v1044_v36 = vpop.eup %1043 }
 0x374   : > { %690 = vadd.xlane.f32.xlu0 %v689_v34  ;;  %v698_v38 = vmul.f32 %v1044_v36, %v1270_v46 }
 0x384   : > { %v702_v37 = vpop.permute.xlu1 %701 }
 0x385   : > { %734 = vmatpush.msrb.mxu2 %v702_v37 }
 0x386   : > { %952 = vmatmul.msk.f32.vlgmr.msrb.gmra.mxu2 %vm277_vm2, %v698_v38 }
 0x3a9   : > { %v558_v39 = vpop.xlane.xlu0 %557 }
 0x3aa   : > { %1045 = vrcp.f32 %v558_v39  ;;  %v561_v40 = vpop.xlane.xlu2 %560 }
 0x3ab   : > { %1047 = vrcp.f32 %v561_v40 }
 0x3ae   : > { %v1310_v44 = vpop.f32.mrf.mxu3 }
 0x3b0   : > { %v1046_v41 = vpop.eup %1045 }
 0x3b1   : > { %v568_v19 = vmul.f32 %v1046_v41, %v1278_v0  ;;  %v1048_v43 = vpop.eup %1047 }
 0x3b2   : > { %v564_v14 = vpop.xlane.xlu2 %563  ;;  %v569_v45 = vmul.f32 %v1048_v43, %v1280_v2 }
 0x3b3   : > { %1049 = vrcp.f32 %v564_v14 }
 0x3b9   : > { %v1050_v46 = vpop.eup %1049 }
 0x3ba   : > { %v570_v48 = vmul.f32 %v1050_v46, %v1287_v8  ;;  %v694_v51 = vpop.xlane.xlu2 %693 }
 0x3bc   : > { %v572_v42 = vpop.permute.xlu0 %571 }
 0x3bd   : > { %604 = vmatpush.msra.mxu3 %v572_v42 }
 0x3be   : > { %943 = vmatmul.msk.f32.vlgmr.msra.gmra.mxu3 %vm277_vm2, %v568_v19 }
 0x3c6   : > { %944 = vmatmul.msk.f32.gmra.mxu3 %vm277_vm2, %v569_v45 }
 0x3cc   : > { %v476_v47 = vpop.f32.mrf.mxu3 }
 0x3cd   : > { %748 = vrot.lane.b32.xlu1 %v476_v47, %s1074_s6 }
 0x3ce   : > { %945 = vmatmul.msk.f32.gmra.mxu3 %vm277_vm2, %v570_v48 }
 0x3d4   : > { %v479_v49 = vpop.f32.mrf.mxu3 }
 0x3d5   : > { %750 = vrot.lane.b32.xlu1 %v479_v49, %s1074_s6 }
 0x3dc   : > { %v482_v56 = vpop.f32.mrf.mxu3 }
 0x3e7   : > { %v691_v50 = vpop.xlane.xlu0 %690 }
 0x3e8   : > { %1051 = vrcp.f32 %v691_v50 }
 0x3e9   : > { %1053 = vrcp.f32 %v694_v51 }
 0x3ee   : > { %v1052_v52 = vpop.eup %1051 }
 0x3ef   : > { %v699_v3 = vmul.f32 %v1052_v52, %v1042_v33  ;;  %v1054_v53 = vpop.eup %1053  ;;  %v837_v33 = vld [vmem:[%s212_s21 + $0x10] sm:$0xff] }
 0x3f0   : > { %v700_v54 = vmul.f32 %v1054_v53, %v1291_v17 }
 0x3f1   : > { %953 = vmatmul.msk.f32.gmra.mxu2 %vm277_vm2, %v699_v3 }
 0x3f9   : > { %954 = vmatmul.msk.f32.gmra.mxu2 %vm277_vm2, %v700_v54 }
 0x409   : > { %v736_v55 = vpop.f32.mrf.mxu2 }
 0x40a   : > { %772 = vrot.lane.b32.xlu0 %v736_v55, %s1075_s7 }
 0x43f   : > { %v749_v5 = vpop.permute.xlu1 %748 }
 0x440   : > { %v781_v6 = vsel %vm233_vm0, %v1228_v11, %v749_v5 }
 0x441   : > { %v606_v57 = vpop.f32.mrf.mxu3 }
 0x442   : > { %760 = vrot.lane.b32.xlu2 %v606_v57, %s1076_s8 }
 0x447   : > { %v751_v13 = vpop.permute.xlu1 %750 }
 0x448   : > { %v782_v16 = vsel %vm233_vm0, %v1230_v12, %v751_v13  ;;  %v1006_v12 = vld [vmem:[%s1366_s3] ss:$0 sm:$0xff] }
 0x449   : > { %v609_v58 = vpop.f32.mrf.mxu3 }
 0x44a   : > { %752 = vrot.lane.b32.xlu2 %v482_v56, %s1074_s6  ;;  %762 = vrot.lane.b32.xlu1 %v609_v58, %s1076_s8 }
 0x451   : > { %v612_v59 = vpop.f32.mrf.mxu3 }
 0x452   : > { %764 = vrot.lane.b32.xlu0 %v612_v59, %s1076_s8 }
 0x474   : > { %v739_v0 = vpop.f32.mrf.mxu2 }
 0x475   : > { %774 = vrot.lane.b32.xlu1 %v739_v0, %s1075_s7 }
 0x47c   : > { %v742_v2 = vpop.f32.mrf.mxu2  ;;  %v773_v8 = vpop.permute.xlu0 %772 }
 0x47d   : > { %776 = vrot.lane.b32.xlu1 %v742_v2, %s1075_s7 }
 0x49c   : > { %v761_v7 = vpop.permute.xlu2 %760 }
 0x49d   : > { %v785_v9 = vsel %vm784_vm3, %v781_v6, %v761_v7 }
 0x49e   : > { %v788_v10 = vsel %vm277_vm2, %v785_v9, %v773_v8 }
 0x49f   : > { %955 = vmatmul.msk.f32.vlgmr.msra.gmra.mxu1 %vm799_vm4, %v788_v10 }
 0x4a4   : > { %v753_v20 = vpop.permute.xlu2 %752 }
 0x4a5   : > { %v783_v22 = vsel %vm233_vm0, %v1310_v44, %v753_v20 }
 0x4bc   : > { %v763_v15 = vpop.permute.xlu1 %762 }
 0x4bd   : > { %v786_v17 = vsel %vm784_vm3, %v782_v16, %v763_v15 }
 0x4c4   : > { %v765_v21 = vpop.permute.xlu0 %764 }
 0x4c5   : > { %v787_v23 = vsel %vm784_vm3, %v783_v22, %v765_v21 }
 0x4e7   : > { %v775_v18 = vpop.permute.xlu1 %774 }
 0x4e8   : > { %v789_v11 = vsel %vm277_vm2, %v786_v17, %v775_v18 }
 0x4e9   : > { %956 = vmatmul.msk.f32.gmra.mxu1 %vm799_vm4, %v789_v11 }
 0x4ef   : > { %v777_v24 = vpop.permute.xlu1 %776 }
 0x4f0   : > { %v790_v25 = vsel %vm277_vm2, %v787_v23, %v777_v24 }
 0x4f1   : > { %957 = vmatmul.msk.f32.gmra.mxu1 %vm799_vm4, %v790_v25 }
 0x51c   : > { %v826_v26 = vpop.f32.mrf.mxu1 }
 0x51d   : > { %v827_v28 = vadd.f32 %v1006_v12, %v826_v26 }
 0x51f   : > { %v838_v29 = vadd.f32 %v835_v27, %v827_v28 }
 0x521   : > { %841 = vst.msk [vmem:[%s217_s26] sm:$0xff] %vm799_vm4, %v838_v29 }
 0x566   : > { %v829_v30 = vpop.f32.mrf.mxu1 }
 0x567   : > { %v830_v31 = vadd.f32 %v1006_v12, %v829_v30 }
 0x569   : > { %v839_v1 = vadd.f32 %v836_v61, %v830_v31 }
 0x56b   : > { %842 = vst.msk [vmem:[%s217_s26 + $0x8] sm:$0xff] %vm799_vm4, %v839_v1 }
 0x56e   : > { %v832_v32 = vpop.f32.mrf.mxu1 }
 0x56f   : > { %v833_v34 = vadd.f32 %v1006_v12, %v832_v32 }
 0x571   : > { %v840_v35 = vadd.f32 %v837_v33, %v833_v34 }
 0x573   : > { %843 = vst.msk [vmem:[%s217_s26 + $0x10] sm:$0xff] %vm799_vm4, %v840_v35 }
 0x574 PF: > { %s14_s15 = sadd.s32 1, %s1061_s15  }
 0x575   : > { %p11_p4 = scmp.ge.s32.totalorder %s14_s15, 4  }
 0x577   :  { %13 = sbr.rel (!%p11_p4) target bundleno = 1 (0x1), region = 69 }

// kernel: vit_wrapper_forward.11
= control target key start
LH: loop header
LB: loop body
LE: loop exit
PB: predicated region body
PF: predicated region fallthrough
CT: control target
= control target key end

     0   :  { %vm34_vm0 = vcmask 261120   ;;  %v444_v12 = vmov 32.0   ;;  %s724_s0 = inlined_call_operand.vmem [shape: f32[48,32], index: 0, kind: input, shape index: {}]   ;;  %s725_s1 = inlined_call_operand.vmem [shape: f32[1,32], index: 1, kind: input, shape index: {}]   ;;  %s726_s2 = inlined_call_operand.vmem [shape: f32[1,32], index: 2, kind: input, shape index: {}]   ;;  %s727_s4 = inlined_call_operand.vmem [shape: f32[1,64], index: 4, kind: input, shape index: {}]   ;;  %s728_s3 = inlined_call_operand.vmem [shape: f32[32,64], index: 3, kind: input, shape index: {}]   ;;  %s729_s6 = inlined_call_operand.vmem [shape: f32[1,32], index: 6, kind: input, shape index: {}]   ;;  %s730_s5 = inlined_call_operand.vmem [shape: f32[64,32], index: 5, kind: input, shape index: {}]   ;;  %s731_s7 = inlined_call_operand.vmem [shape: f32[48,32], index: 7, kind: output, shape index: {}]  }
   0x1   :  { %v488_v0 = vld [vmem:[%s724_s0 + $0x20] sm:$0xff]  ;;  %v493_v1 = vld [vmem:[%s724_s0 + $0x10] sm:$0xff]  ;;  %v509_v6 = vld [vmem:[%s724_s0 + $0x28] sm:$0xff]  ;;  %418 = vrcp.f32 %v444_v12 }
   0x2   :  { %v498_v2 = vld [vmem:[%s724_s0] sm:$0xff]  ;;  %v47_v3 = vsel %vm34_vm0, %v488_v0, 0.0  ;;  %v41_v4 = vsel %vm34_vm0, %v493_v1, 0.0  ;;  %v514_v7 = vld [vmem:[%s724_s0 + $0x18] sm:$0xff]  ;;  %v519_v8 = vld [vmem:[%s724_s0 + $0x8] sm:$0xff]  ;;  %v50_v9 = vsel %vm34_vm0, %v509_v6, 0.0 }
   0x3   :  { %v35_v5 = vsel %vm34_vm0, %v498_v2, 0.0  ;;  %48 = vadd.xlane.f32.xlu2 %v47_v3  ;;  %42 = vadd.xlane.f32.xlu1 %v41_v4  ;;  %v44_v10 = vsel %vm34_vm0, %v514_v7, 0.0  ;;  %v38_v11 = vsel %vm34_vm0, %v519_v8, 0.0  ;;  %v195_v49 = vld [vmem:[%s728_s3 + $0x18] sm:$0xff]  ;;  %v194_v50 = vld [vmem:[%s728_s3 + $0x10] sm:$0xff]  ;;  %v193_v51 = vld [vmem:[%s728_s3 + $0x8] sm:$0xff] }
   0x4   :  { %36 = vadd.xlane.f32.xlu0 %v35_v5  ;;  %230 = vmatpush.msra.mxu0 %v195_v49  ;;  %v192_v52 = vld [vmem:[%s728_s3] sm:$0xff] }
   0x5   :  { %401 = vmatpush.msra.mxu3 %v195_v49 }
   0x6   :  { %231 = vmatpush.msra.mxu0 %v194_v50 }
   0x7   :  { %v419_v13 = vpop.eup %418  ;;  %402 = vmatpush.msra.mxu3 %v194_v50 }
   0x8   :  { %v54_v14 = vmul.f32 32.0, %v419_v13  ;;  %vm58_vm1 = vweird.f32 %v419_v13  ;;  %232 = vmatpush.msra.mxu0 %v193_v51 }
   0x9   :  { %403 = vmatpush.msra.mxu3 %v193_v51 }
   0xa   :  { %v55_v15 = vsub.f32 1.0, %v54_v14  ;;  %233 = vmatpush.msra.mxu0 %v192_v52 }
   0xb   :  { %51 = vadd.xlane.f32.xlu2 %v50_v9  ;;  %45 = vadd.xlane.f32.xlu1 %v44_v10 }
   0xc   :  { %39 = vadd.xlane.f32.xlu0 %v38_v11  ;;  %v56_v16 = vmul.f32 %v419_v13, %v55_v15  ;;  %404 = vmatpush.msra.mxu3 %v192_v52 }
   0xe   :  { %v57_v17 = vadd.f32 %v419_v13, %v56_v16 }
  0x10   :  { %v527_v18 = vsel %vm58_vm1, %v419_v13, %v57_v17 }
  0x76   :  { %v49_v19 = vpop.xlane.xlu2 %48  ;;  %v43_v20 = vpop.xlane.xlu1 %42 }
  0x77   :  { %v62_v21 = vmul.f32 %v527_v18, %v43_v20  ;;  %v37_v22 = vpop.xlane.xlu0 %36  ;;  %v64_v35 = vmul.f32 %v527_v18, %v49_v19 }
  0x78   :  { %v60_v23 = vmul.f32 %v527_v18, %v37_v22 }
  0x79   :  { %v532_v24 = vsub.f32 %v493_v1, %v62_v21  ;;  %v561_v42 = vsub.f32 %v488_v0, %v64_v35  ;;  %v415_v35 = vld [vmem:[%s726_s2] ss:$0 sm:$0xff] }
  0x7a   :  { %v535_v25 = vsub.f32 %v498_v2, %v60_v23 }
  0x7b   :  { %v74_v26 = vmul.f32 %v532_v24, %v532_v24  ;;  %v76_v47 = vmul.f32 %v561_v42, %v561_v42 }
  0x7c   :  { %v72_v27 = vmul.f32 %v535_v25, %v535_v25 }
  0x7d   :  { %v84_v28 = vsel %vm34_vm0, %v74_v26, 0.0  ;;  %v90_v48 = vsel %vm34_vm0, %v76_v47, 0.0 }
  0x7e   :  { %v52_v29 = vpop.xlane.xlu2 %51  ;;  %85 = vadd.xlane.f32.xlu2 %v84_v28  ;;  %v46_v30 = vpop.xlane.xlu1 %45  ;;  %v78_v31 = vsel %vm34_vm0, %v72_v27, 0.0 }
  0x7f   :  { %v65_v32 = vmul.f32 %v527_v18, %v52_v29  ;;  %v63_v33 = vmul.f32 %v527_v18, %v46_v30  ;;  %79 = vadd.xlane.f32.xlu0 %v78_v31  ;;  %v40_v34 = vpop.xlane.xlu0 %39 }
  0x80   :  { %v61_v36 = vmul.f32 %v527_v18, %v40_v34 }
  0x81   :  { %v548_v37 = vsub.f32 %v509_v6, %v65_v32  ;;  %v551_v38 = vsub.f32 %v514_v7, %v63_v33 }
  0x82   :  { %v554_v39 = vsub.f32 %v519_v8, %v61_v36 }
  0x83   :  { %v77_v40 = vmul.f32 %v548_v37, %v548_v37  ;;  %v75_v41 = vmul.f32 %v551_v38, %v551_v38 }
  0x84   :  { %v73_v43 = vmul.f32 %v554_v39, %v554_v39 }
  0x85   :  { %v93_v44 = vsel %vm34_vm0, %v77_v40, 0.0  ;;  %v87_v45 = vsel %vm34_vm0, %v75_v41, 0.0 }
  0x86   :  { %94 = vadd.xlane.f32.xlu2 %v93_v44  ;;  %v81_v46 = vsel %vm34_vm0, %v73_v43, 0.0 }
  0x87   :  { %88 = vadd.xlane.f32.xlu0 %v87_v45  ;;  %82 = vadd.xlane.f32.xlu1 %v81_v46 }
  0x8f   :  { %91 = vadd.xlane.f32.xlu1 %v90_v48 }
  0xf1   :  { %v86_v53 = vpop.xlane.xlu2 %85 }
  0xf2   :  { %v98_v54 = vmul.f32 %v86_v53, %v527_v18  ;;  %v80_v55 = vpop.xlane.xlu0 %79 }
  0xf3   :  { %v96_v56 = vmul.f32 %v80_v55, %v527_v18 }
  0xf4   :  { %v104_v57 = vadd.f32 1e-06, %v98_v54 }
  0xf5   :  { %v102_v58 = vadd.f32 1e-06, %v96_v56 }
  0xf6   :  { %420 = vrsqrt.f32 %v104_v57  ;;  %vm134_vm5 = vweird.f32 %v104_v57 }
  0xf7   :  { %422 = vrsqrt.f32 %v102_v58  ;;  %vm114_vm3 = vweird.f32 %v102_v58 }
  0xf9   :  { %v95_v59 = vpop.xlane.xlu2 %94 }
  0xfa   :  { %v101_v60 = vmul.f32 %v95_v59, %v527_v18  ;;  %v83_v61 = vpop.xlane.xlu1 %82  ;;  %v89_v62 = vpop.xlane.xlu0 %88 }
  0xfb   :  { %v97_v63 = vmul.f32 %v83_v61, %v527_v18  ;;  %v99_v3 = vmul.f32 %v89_v62, %v527_v18 }
  0xfc   :  { %v588_v4 = vpop.eup %420  ;;  %v590_v5 = vadd.f32 1e-06, %v101_v60 }
  0xfd   :  { %v423_v9 = vpop.eup %422  ;;  %v103_v10 = vadd.f32 1e-06, %v97_v63  ;;  %v592_v11 = vadd.f32 1e-06, %v99_v3  ;;  %v129_v12 = vmul.f32 %v588_v4, %v104_v57  ;;  %vm135_vm6 = vweird.f32 %v588_v4 }
  0xfe   :  { %v109_v13 = vmul.f32 %v423_v9, %v102_v58  ;;  %424 = vrsqrt.f32 %v590_v5  ;;  %vm115_vm2 = vweird.f32 %v423_v9  ;;  %vm621_vm8 = vmor %vm134_vm5, %vm135_vm6  ;;  %vm164_vm11 = vweird.f32 %v590_v5 }
  0xff   :  { %426 = vrsqrt.f32 %v103_v10  ;;  %v130_v15 = vmul.f32 %v588_v4, %v129_v12  ;;  %vm116_vm4 = vmor %vm114_vm3, %vm115_vm2  ;;  %vm124_vm9 = vweird.f32 %v103_v10  ;;  %vm144_vm13 = vweird.f32 %v592_v11 }
 0x100   :  { %v110_v14 = vmul.f32 %v423_v9, %v109_v13  ;;  %428 = vrsqrt.f32 %v592_v11  ;;  %vm319_vm5 = vcmask 523264  }
 0x101   :  { %v131_v27 = vmul.f32 0.5, %v130_v15 }
 0x102   :  { %v111_v16 = vmul.f32 0.5, %v110_v14  ;;  %v92_v17 = vpop.xlane.xlu1 %91 }
 0x103   :  { %v100_v19 = vmul.f32 %v92_v17, %v527_v18  ;;  %v610_v18 = vld [vmem:[%s725_s1] ss:$0 sm:$0xff]  ;;  %v132_v36 = vsub.f32 1.5, %v131_v27  ;;  %v309_v27 = vld [vmem:[%s730_s5 + $0x10] sm:$0xff] }
 0x104   :  { %v599_v20 = vpop.eup %424  ;;  %v112_v21 = vsub.f32 1.5, %v111_v16 }
 0x105   :  { %v427_v22 = vpop.eup %426  ;;  %v106_v23 = vadd.f32 1e-06, %v100_v19  ;;  %v159_v30 = vmul.f32 %v599_v20, %v590_v5  ;;  %vm165_vm12 = vweird.f32 %v599_v20 }
 0x106   :  { %v601_v26 = vpop.eup %428  ;;  %v113_v28 = vmul.f32 %v423_v9, %v112_v21  ;;  %v119_v29 = vmul.f32 %v427_v22, %v103_v10  ;;  %vm125_vm7 = vweird.f32 %v427_v22  ;;  %vm636_vm2 = vmor %vm164_vm11, %vm165_vm12 }
 0x107   :  { %v139_v31 = vmul.f32 %v601_v26, %v592_v11  ;;  %430 = vrsqrt.f32 %v106_v23  ;;  %v160_v43 = vmul.f32 %v599_v20, %v159_v30  ;;  %vm126_vm10 = vmor %vm124_vm9, %vm125_vm7  ;;  %vm145_vm14 = vweird.f32 %v601_v26  ;;  %v416_v30 = vld [vmem:[%s727_s4] ss:$0 sm:$0xff] }
 0x108   :  { %v117_v32 = vsel %vm116_vm4, %v423_v9, %v113_v28  ;;  %v120_v33 = vmul.f32 %v427_v22, %v119_v29  ;;  %vm154_vm15 = vweird.f32 %v106_v23  ;;  %vm146_vm3 = vmor %vm144_vm13, %vm145_vm14  ;;  %v308_v28 = vld [vmem:[%s730_s5 + $0x8] sm:$0xff]  ;;  %v307_v29 = vld [vmem:[%s730_s5] sm:$0xff] }
 0x109   :  { %v168_v34 = vmul.f32 %v117_v32, %v535_v25  ;;  %v140_v41 = vmul.f32 %v601_v26, %v139_v31  ;;  %v133_v25 = vmul.f32 %v588_v4, %v132_v36  ;;  %v161_v51 = vmul.f32 0.5, %v160_v43 }
 0x10a   :  { %v121_v40 = vmul.f32 0.5, %v120_v33 }
 0x10b   :  { %v177_v44 = vmul.f32 %v610_v18, %v168_v34  ;;  %v141_v50 = vmul.f32 0.5, %v140_v41  ;;  %v137_v56 = vsel %vm621_vm8, %v588_v4, %v133_v25  ;;  %v162_v58 = vsub.f32 1.5, %v161_v51 }
 0x10c   :  { %v122_v45 = vsub.f32 1.5, %v121_v40  ;;  %v170_v62 = vmul.f32 %v137_v56, %v532_v24 }
 0x10d   :  { %v186_v46 = vadd.f32 %v415_v35, %v177_v44  ;;  %v431_v47 = vpop.eup %430  ;;  %v142_v57 = vsub.f32 1.5, %v141_v50  ;;  %v163_v4 = vmul.f32 %v599_v20, %v162_v58 }
 0x10e   :  { %v123_v49 = vmul.f32 %v427_v22, %v122_v45  ;;  %v149_v52 = vmul.f32 %v431_v47, %v106_v23  ;;  %vm155_vm1 = vweird.f32 %v431_v47  ;;  %v179_v10 = vmul.f32 %v610_v18, %v170_v62  ;;  %v311_v23 = vld [vmem:[%s730_s5 + $0x20] sm:$0xff] }
 0x10f   :  { %389 = vmatmul.msk.f32.vlgmr.msra.gmra.mxu0 %vm34_vm0, %v186_v46  ;;  %v143_v3 = vmul.f32 %v601_v26, %v142_v57  ;;  %vm156_vm4 = vmor %vm154_vm15, %vm155_vm1  ;;  %v167_v12 = vsel %vm636_vm2, %v599_v20, %v163_v4  ;;  %v312_v20 = vld [vmem:[%s730_s5 + $0x28] sm:$0xff] }
 0x110   :  { %v127_v53 = vsel %vm126_vm10, %v427_v22, %v123_v49  ;;  %v150_v54 = vmul.f32 %v431_v47, %v149_v52  ;;  %v188_v14 = vadd.f32 %v415_v35, %v179_v10  ;;  %v173_v17 = vmul.f32 %v167_v12, %v548_v37  ;;  %v313_v37 = vld [vmem:[%s730_s5 + $0x30] sm:$0xff] }
 0x111   :  { %v169_v55 = vmul.f32 %v127_v53, %v554_v39  ;;  %v147_v11 = vsel %vm146_vm3, %v601_v26, %v143_v3  ;;  %v310_v26 = vld [vmem:[%s730_s5 + $0x18] sm:$0xff] }
 0x112   :  { %v151_v59 = vmul.f32 0.5, %v150_v54  ;;  %v171_v15 = vmul.f32 %v147_v11, %v551_v38  ;;  %v314_v38 = vld [vmem:[%s730_s5 + $0x38] sm:$0xff] }
 0x113   :  { %v178_v60 = vmul.f32 %v610_v18, %v169_v55  ;;  %346 = vmatpush.msra.mxu1 %v314_v38  ;;  %405 = vmatpush.msra.mxu2 %v314_v38 }
 0x114   :  { %v152_v61 = vsub.f32 1.5, %v151_v59  ;;  %v180_v19 = vmul.f32 %v610_v18, %v171_v15 }
 0x115   :  { %v187_v39 = vadd.f32 %v415_v35, %v178_v60  ;;  %347 = vmatpush.msra.mxu1 %v313_v37  ;;  %406 = vmatpush.msra.mxu2 %v313_v37 }
 0x116   :  { %v153_v5 = vmul.f32 %v431_v47, %v152_v61  ;;  %v189_v21 = vadd.f32 %v415_v35, %v180_v19 }
 0x117   :  { %390 = vmatmul.msk.f32.gmra.mxu0 %vm34_vm0, %v187_v39  ;;  %348 = vmatpush.msra.mxu1 %v312_v20 }
 0x118   :  { %v157_v9 = vsel %vm156_vm4, %v431_v47, %v153_v5  ;;  %407 = vmatpush.msra.mxu2 %v312_v20 }
 0x119   :  { %v172_v24 = vmul.f32 %v157_v9, %v561_v42  ;;  %v182_v42 = vmul.f32 %v610_v18, %v173_v17  ;;  %349 = vmatpush.msra.mxu1 %v311_v23 }
 0x11a   :  { %408 = vmatpush.msra.mxu2 %v311_v23 }
 0x11b   :  { %v181_v13 = vmul.f32 %v610_v18, %v172_v24  ;;  %v191_v22 = vadd.f32 %v415_v35, %v182_v42  ;;  %350 = vmatpush.msra.mxu1 %v310_v26 }
 0x11c   :  { %409 = vmatpush.msra.mxu2 %v310_v26 }
 0x11d   :  { %v190_v16 = vadd.f32 %v415_v35, %v181_v13  ;;  %351 = vmatpush.msra.mxu1 %v309_v27 }
 0x11e   :  { %410 = vmatpush.msra.mxu2 %v309_v27 }
 0x11f   :  { %391 = vmatmul.msk.f32.gmra.mxu0 %vm34_vm0, %v188_v14  ;;  %393 = vmatmul.msk.f32.vlgmr.msra.gmra.mxu3 %vm34_vm0, %v190_v16 }
 0x120   :  { %352 = vmatpush.msra.mxu1 %v308_v28  ;;  %411 = vmatpush.msra.mxu2 %v308_v28 }
 0x122   :  { %353 = vmatpush.msra.mxu1 %v307_v29  ;;  %412 = vmatpush.msra.mxu2 %v307_v29 }
 0x127   :  { %392 = vmatmul.msk.f32.gmra.mxu0 %vm34_vm0, %v189_v21  ;;  %394 = vmatmul.msk.f32.gmra.mxu3 %vm34_vm0, %v191_v22 }
 0x18c   :  { %v235_v31 = vpop.f32.mrf.mxu0 }
 0x18d   :  { %v236_v18 = vadd.f32 %v416_v30, %v235_v31 }
 0x18f   :  { %v253_v32 = vmul.f32 %v236_v18, %v236_v18 }
 0x191   :  { %v259_v33 = vmul.f32 %v253_v32, %v236_v18 }
 0x193   :  { %v265_v34 = vmul.f32 0.044715, %v259_v33 }
 0x194   :  { %v238_v35 = vpop.f32.mrf.mxu0 }
 0x195   :  { %v271_v36 = vadd.f32 %v265_v34, %v236_v18  ;;  %v239_v40 = vadd.f32 %v416_v30, %v238_v35 }
 0x197   :  { %v254_v41 = vmul.f32 %v239_v40, %v239_v40  ;;  %v277_v43 = vmul.f32 0.7978846, %v271_v36 }
 0x199   :  { %v260_v44 = vmul.f32 %v254_v41, %v239_v40  ;;  %432 = vtanh.f32 %v277_v43  ;;  %v417_v41 = vld [vmem:[%s729_s6] ss:$0 sm:$0xff] }
 0x19b   :  { %v266_v45 = vmul.f32 0.044715, %v260_v44 }
 0x19c   :  { %v241_v46 = vpop.f32.mrf.mxu0 }
 0x19d   :  { %v272_v47 = vadd.f32 %v266_v45, %v239_v40  ;;  %v242_v25 = vadd.f32 %v416_v30, %v241_v46 }
 0x19f   :  { %v433_v48 = vpop.eup %432  ;;  %v255_v49 = vmul.f32 %v242_v25, %v242_v25  ;;  %v278_v50 = vmul.f32 0.7978846, %v272_v47 }
 0x1a0   :  { %v289_v51 = vadd.f32 1.0, %v433_v48 }
 0x1a1   :  { %v261_v52 = vmul.f32 %v255_v49, %v242_v25  ;;  %434 = vtanh.f32 %v278_v50 }
 0x1a2   :  { %v295_v53 = vmul.f32 0.5, %v289_v51  ;;  %v247_v55 = vpop.f32.mrf.mxu3 }
 0x1a3   :  { %v267_v54 = vmul.f32 0.044715, %v261_v52  ;;  %v248_v56 = vadd.f32 %v416_v30, %v247_v55 }
 0x1a4   :  { %v244_v57 = vpop.f32.mrf.mxu0  ;;  %v301_v58 = vmul.f32 %v295_v53, %v236_v18 }
 0x1a5   :  { %v273_v59 = vadd.f32 %v267_v54, %v242_v25  ;;  %v245_v60 = vadd.f32 %v416_v30, %v244_v57  ;;  %v257_v61 = vmul.f32 %v248_v56, %v248_v56 }
 0x1a6   :  { %395 = vmatmul.msk.f32.vlgmr.msra.gmra.mxu1 %vm319_vm5, %v301_v58 }
 0x1a7   :  { %v435_v39 = vpop.eup %434  ;;  %v256_v62 = vmul.f32 %v245_v60, %v245_v60  ;;  %v279_v63 = vmul.f32 0.7978846, %v273_v59  ;;  %v263_v3 = vmul.f32 %v257_v61, %v248_v56 }
 0x1a8   :  { %v290_v4 = vadd.f32 1.0, %v435_v39 }
 0x1a9   :  { %v262_v5 = vmul.f32 %v256_v62, %v245_v60  ;;  %436 = vtanh.f32 %v279_v63  ;;  %v269_v9 = vmul.f32 0.044715, %v263_v3 }
 0x1aa   :  { %v296_v10 = vmul.f32 0.5, %v290_v4  ;;  %v250_v24 = vpop.f32.mrf.mxu3 }
 0x1ab   :  { %v268_v11 = vmul.f32 0.044715, %v262_v5  ;;  %v275_v12 = vadd.f32 %v269_v9, %v248_v56  ;;  %v251_v13 = vadd.f32 %v416_v30, %v250_v24 }
 0x1ac   :  { %v302_v14 = vmul.f32 %v296_v10, %v239_v40 }
 0x1ad   :  { %v274_v15 = vadd.f32 %v268_v11, %v245_v60  ;;  %v258_v16 = vmul.f32 %v251_v13, %v251_v13  ;;  %v281_v42 = vmul.f32 0.7978846, %v275_v12 }
 0x1ae   :  { %396 = vmatmul.msk.f32.gmra.mxu1 %vm319_vm5, %v302_v14 }
 0x1af   :  { %v437_v17 = vpop.eup %436  ;;  %v280_v19 = vmul.f32 0.7978846, %v274_v15  ;;  %v264_v21 = vmul.f32 %v258_v16, %v251_v13 }
 0x1b0   :  { %v291_v22 = vadd.f32 1.0, %v437_v17 }
 0x1b1   :  { %438 = vtanh.f32 %v280_v19  ;;  %v270_v38 = vmul.f32 0.044715, %v264_v21 }
 0x1b2   :  { %v297_v37 = vmul.f32 0.5, %v291_v22  ;;  %440 = vtanh.f32 %v281_v42 }
 0x1b3   :  { %v276_v20 = vadd.f32 %v270_v38, %v251_v13 }
 0x1b4   :  { %v303_v23 = vmul.f32 %v297_v37, %v242_v25 }
 0x1b5   :  { %v282_v27 = vmul.f32 0.7978846, %v276_v20 }
 0x1b6   :  { %397 = vmatmul.msk.f32.gmra.mxu1 %vm319_vm5, %v303_v23 }
 0x1b7   :  { %v439_v26 = vpop.eup %438  ;;  %442 = vtanh.f32 %v282_v27 }
 0x1b8   :  { %v292_v28 = vadd.f32 1.0, %v439_v26  ;;  %v441_v29 = vpop.eup %440 }
 0x1b9   :  { %v293_v18 = vadd.f32 1.0, %v441_v29 }
 0x1ba   :  { %v298_v30 = vmul.f32 0.5, %v292_v28 }
 0x1bb   :  { %v299_v32 = vmul.f32 0.5, %v293_v18 }
 0x1bc   :  { %v304_v31 = vmul.f32 %v298_v30, %v245_v60 }
 0x1bd   :  { %v443_v33 = vpop.eup %442  ;;  %v305_v34 = vmul.f32 %v299_v32, %v248_v56 }
 0x1be   :  { %398 = vmatmul.msk.f32.vlgmr.msra.gmra.mxu2 %vm319_vm5, %v304_v31  ;;  %v294_v35 = vadd.f32 1.0, %v443_v33 }
 0x1c0   :  { %v300_v36 = vmul.f32 0.5, %v294_v35 }
 0x1c2   :  { %v306_v40 = vmul.f32 %v300_v36, %v251_v13 }
 0x1c6   :  { %399 = vmatmul.msk.f32.gmra.mxu2 %vm319_vm5, %v305_v34 }
 0x1ce   :  { %400 = vmatmul.msk.f32.gmra.mxu2 %vm319_vm5, %v306_v40 }
 0x223   :  { %v355_v43 = vpop.f32.mrf.mxu1 }
 0x224   :  { %v356_v44 = vadd.f32 %v417_v41, %v355_v43 }
 0x226   :  { %v373_v45 = vadd.f32 %v356_v44, %v498_v2 }
 0x228   :  { %379 = vst.msk [vmem:[%s731_s7] sm:$0xff] %vm34_vm0, %v373_v45 }
 0x22b   :  { %v358_v46 = vpop.f32.mrf.mxu1 }
 0x22c   :  { %v359_v47 = vadd.f32 %v417_v41, %v358_v46 }
 0x22e   :  { %v374_v25 = vadd.f32 %v359_v47, %v519_v8 }
 0x230   :  { %380 = vst.msk [vmem:[%s731_s7 + $0x8] sm:$0xff] %vm34_vm0, %v374_v25 }
 0x233   :  { %v361_v48 = vpop.f32.mrf.mxu1 }
 0x234   :  { %v362_v49 = vadd.f32 %v417_v41, %v361_v48 }
 0x236   :  { %v375_v50 = vadd.f32 %v362_v49, %v493_v1 }
 0x238   :  { %381 = vst.msk [vmem:[%s731_s7 + $0x10] sm:$0xff] %vm34_vm0, %v375_v50 }
 0x241   :  { %v364_v2 = vpop.f32.mrf.mxu2 }
 0x242   :  { %v365_v51 = vadd.f32 %v417_v41, %v364_v2 }
 0x244   :  { %v376_v52 = vadd.f32 %v365_v51, %v514_v7 }
 0x246   :  { %382 = vst.msk [vmem:[%s731_s7 + $0x18] sm:$0xff] %vm34_vm0, %v376_v52 }
 0x249   :  { %v367_v8 = vpop.f32.mrf.mxu2 }
 0x24a   :  { %v368_v53 = vadd.f32 %v417_v41, %v367_v8 }
 0x24c   :  { %v377_v54 = vadd.f32 %v368_v53, %v488_v0 }
 0x24e   :  { %383 = vst.msk [vmem:[%s731_s7 + $0x20] sm:$0xff] %vm34_vm0, %v377_v54 }
 0x251   :  { %v370_v1 = vpop.f32.mrf.mxu2 }
 0x252   :  { %v371_v55 = vadd.f32 %v417_v41, %v370_v1 }
 0x254   :  { %v378_v56 = vadd.f32 %v371_v55, %v509_v6 }
 0x256   :  { %384 = vst.msk [vmem:[%s731_s7 + $0x28] sm:$0xff] %vm34_vm0, %v378_v56 }

</bundles_post_ra>
